<compile_context>
chip_gen: v6e
topology: v6e:2x2x1
jax: 0.10.0
libtpu: 0.0.40
codegen_flags: <defaults>
</compile_context>

<pallas_src>
import math
import functools

import jax
import jax.numpy as jnp
from jax.experimental import pallas as pl
from jax.experimental.pallas import tpu as pltpu

STAT_LANES = 128   # lane-dense per-step stats row: [mean_0..mean_{D-1}, ESS, 0, ...]


# --------------------------------------------------------------------------
# Fused Pallas kernel: whole particle filter for one batch element, grid=(B,)
# --------------------------------------------------------------------------
def _pf_kernel(u_ref, obs_ref, A_ref, H_ref, eps_ref,          # inputs
               x_ref, w_ref, stats_ref,                        # outputs (per-batch blocks)
               *, B, T, N, D, Dy, sigma_x, inv_obs_var, log_norm_const, log_n):
    f32 = jnp.float32
    b = pl.program_id(0)

    # ---- loop-invariant constants, hoisted out of the time loop -----------
    A_m = A_ref[...]                                            # (D, D)
    H_m = H_ref[...]                                            # (Hp, D), rows >= Dy are zero
    lane_f = jax.lax.broadcasted_iota(jnp.int32, (1, N), 1).astype(f32)   # slot index i
    row_f = jax.lax.broadcasted_iota(jnp.int32, (N, 1), 0).astype(f32)    # particle index m
    last_row = row_f == f32(N - 1)
    tri = (jax.lax.broadcasted_iota(jnp.int32, (N, N), 1)
           <= jax.lax.broadcasted_iota(jnp.int32, (N, N), 0))   # k <= m (inclusive-cumsum mask)
    inv_n = f32(1.0 / N)
    neg_half_prec = f32(-0.5 * inv_obs_var)

    stats_ref[...] = jnp.zeros((T + 1, STAT_LANES), f32)

    def weight_and_stats(t, x_new, log_w_prev):
        # ---- log f_t(y_t | x_t):  y ~ N(H x, sigma_y^2 I)  -----------------
        y_pred = jnp.dot(H_m, x_new, preferred_element_type=f32)          # (Hp, N)  MXU
        base = (t * B + b) * Dy
        ssq = jnp.zeros((1, N), f32)
        for j in range(Dy):                                   # Dy is tiny, static unroll
            r = y_pred[j:j + 1, :] - obs_ref[base + j]        # scalar obs from SMEM
            ssq = ssq + r * r
        log_w = log_w_prev + neg_half_prec * ssq + f32(log_norm_const)    # (1, N)

        # ---- normalise_log_quantity: log_w - logsumexp(log_w) --------------
        m = jnp.max(log_w, axis=1, keepdims=True)
        lse = m + jnp.log(jnp.sum(jnp.exp(log_w - m), axis=1, keepdims=True))
        log_nw = log_w - lse
        w_norm = jnp.exp(log_nw)                                          # (1, N)

        # ---- per-step statistics: weighted mean (one MXU matmul) + ESS -----
        mean_row = jnp.dot(w_norm, x_new.T, preferred_element_type=f32)   # (1, D)
        ess = 1.0 / jnp.sum(w_norm * w_norm, axis=1, keepdims=True)       # (1, 1)
        stats_ref[pl.ds(t, 1), 0:D] = mean_row
        stats_ref[pl.ds(t, 1), D:D + 1] = ess
        return log_w, log_nw

    # ---- t = 0: initialise  (x_0 ~ M_0 = N(0, I),  log_w = log f_0) --------
    x0 = eps_ref[0]                                                       # (D, N)
    log_w0, log_nw0 = weight_and_stats(0, x0, jnp.zeros((1, N), f32))

    # ---- t = 1..T: resample -> propagate -> reweight ------------------------
    def body(t, carry):
        x_prev, _log_w_prev, log_nw_prev = carry
        w_prev = jnp.exp(log_nw_prev)                                     # (1, N)

        # systematic resampling, index-count formulation:
        #   a_i = #{m : C_m < u_i},  S[m, i] = 1 iff m == a_i  (one pick per slot)
        c_col = jnp.sum(jnp.where(tri, w_prev, f32(0.0)),
                        axis=1, keepdims=True)                            # (N, 1) inclusive cumsum
        c_col = jnp.where(last_row, f32(2.0), c_col)                      # fp-safe top bucket
        u0 = u_ref[b * (T + 1) + t]                                       # stratified offset (SMEM)
        u_row = (u0 + lane_f) * inv_n                                     # (1, N)
        idx = jnp.sum((c_col < u_row).astype(f32), axis=0, keepdims=True)  # (1, N) chosen index
        S = (row_f == idx).astype(f32)                                    # (N, N) one-hot columns
        x_res = jnp.dot(x_prev, S, preferred_element_type=f32)            # gather via MXU (D,N)

        # M_t proposal: x_t = A x_{t-1} + sigma_x * eps_t   (MXU + VPU)
        x_new = jnp.dot(A_m, x_res, preferred_element_type=f32) + f32(sigma_x) * eps_ref[t]

        # resampler returned uniform weights -log(N)  (resample-every-step branch)
        log_w, log_nw = weight_and_stats(t, x_new, jnp.full((1, N), -log_n, f32))
        return (x_new, log_w, log_nw)

    x_T, log_w_T, log_nw_T = jax.lax.fori_loop(1, T + 1, body, (x0, log_w0, log_nw0))

    # ---- single writeback of the final particle cloud / weights -------------
    x_ref[...] = x_T
    w_ref[0:1, :] = log_w_T
    w_ref[1:2, :] = log_nw_T


def make_fused_pf(B, T, N, D, Dy, hp_rows, sigma_x, sigma_y):
    inv_obs_var = 1.0 / (sigma_y * sigma_y)
    log_norm_const = -0.5 * Dy * math.log(2.0 * math.pi * sigma_y * sigma_y)
    kernel = functools.partial(
        _pf_kernel, B=B, T=T, N=N, D=D, Dy=Dy, sigma_x=float(sigma_x),
        inv_obs_var=inv_obs_var, log_norm_const=log_norm_const, log_n=math.log(N))

    grid_spec = pltpu.PrefetchScalarGridSpec(
        num_scalar_prefetch=0,
        grid=(B,),                                              # batch parallel (2 TCs on v7x)
        in_specs=[
            pl.BlockSpec(memory_space=pltpu.MemorySpace.SMEM),            # u flat (B*(T+1),) f32
            pl.BlockSpec(memory_space=pltpu.MemorySpace.SMEM),            # obs flat ((T+1)*B*Dy,)
            pl.BlockSpec((D, D), lambda b: (0, 0)),                       # A (D, D)
            pl.BlockSpec((hp_rows, D), lambda b: (0, 0)),                 # H padded (hp_rows, D)
            pl.BlockSpec((None, T + 1, D, N), lambda b: (b, 0, 0, 0)),    # eps (B, T+1, D, N)
        ],
        out_specs=[
            pl.BlockSpec((None, D, N), lambda b: (b, 0, 0)),              # particles  (B, D, N)
            pl.BlockSpec((None, 2, N), lambda b: (b, 0, 0)),              # [log_w; log_nw]
            pl.BlockSpec((None, T + 1, STAT_LANES), lambda b: (b, 0, 0)),  # per-step stats
        ],
    )
    out_shape = (
        jax.ShapeDtypeStruct((B, D, N), jnp.float32),
        jax.ShapeDtypeStruct((B, 2, N), jnp.float32),
        jax.ShapeDtypeStruct((B, T + 1, STAT_LANES), jnp.float32),
    )
    # Budget VMEM for large T (noise block + stats block, double-buffered).
    per_batch_bytes = 4 * ((T + 1) * D * N + (T + 1) * STAT_LANES + D * N + 2 * N)
    vmem_limit = None
    if 4 * per_batch_bytes > 24 * 1024 * 1024:
        vmem_limit = min(int(6 * per_batch_bytes), 96 * 1024 * 1024)
    return pl.pallas_call(
        kernel,
        out_shape=out_shape,
        grid_spec=grid_spec,
        compiler_params=pltpu.CompilerParams(
            dimension_semantics=("parallel",),
            vmem_limit_bytes=vmem_limit),
    )


# --------------------------------------------------------------------------
# Differentiable particle filter (Bootstrap) — forward()
# --------------------------------------------------------------------------
class DifferentiableParticleFilterPallas:
    def __init__(self, n_particles, state_dim, obs_dim, A, H, sigma_x, sigma_y,
                 ESS_threshold=None):
        assert n_particles % 128 == 0
        assert state_dim + 1 <= STAT_LANES
        self.N = n_particles
        self.D = state_dim
        self.Dy = obs_dim
        self.A = jnp.asarray(A, jnp.float32)                    # (D, D)
        self.hp_rows = -(-obs_dim // 8) * 8                     # pad obs rows to sublane multiple
        Hp = jnp.zeros((self.hp_rows, state_dim), jnp.float32)
        self.Hp = Hp.at[:obs_dim].set(jnp.asarray(H, jnp.float32))
        self.sigma_x = float(sigma_x)
        self.sigma_y = float(sigma_y)
        # ESS_threshold >= n_particles -> resample at every step (torch "else" branch)
        self.ESS_threshold = n_particles if ESS_threshold is None else ESS_threshold
        self._calls = {}

    def _fused_call(self, B, T):
        key = (B, T)
        if key not in self._calls:
            self._calls[key] = make_fused_pf(B, T, self.N, self.D, self.Dy,
                                             self.hp_rows, self.sigma_x, self.sigma_y)
        return self._calls[key]

    def forward(self, observations, iterations, key):
        """observations: (iterations+1, B, Dy).  Returns dict of statistics."""
        T = iterations
        B = observations.shape[1]
        k_eps, k_u = jax.random.split(key)
        # process / prior noise, drawn host-side (proper stream separation)
        eps = jax.random.normal(k_eps, (B, T + 1, self.D, self.N), jnp.float32)
        # stratified resampling offsets, flat 1-D SMEM layout: index = b*(T+1) + t
        u_flat = jax.random.uniform(k_u, (B * (T + 1),), jnp.float32)
        obs_flat = jnp.asarray(observations, jnp.float32).reshape(-1)

        x_dn, w2, stats = self._fused_call(B, T)(u_flat, obs_flat, self.A, self.Hp, eps)

        return {
            "x_t": jnp.transpose(x_dn, (0, 2, 1)),                            # (B, N, D)
            "log_weights": w2[:, 0, :],                                       # (B, N)
            "log_normalised_weights": w2[:, 1, :],                            # (B, N)
            "posterior_means": jnp.transpose(stats[:, :, :self.D], (1, 0, 2)),  # (T+1, B, D)
            "ESS": jnp.transpose(stats[:, :, self.D], (1, 0)),                # (T+1, B)
        }


# --------------------------------------------------------------------------
# Main
# --------------------------------------------------------------------------
if __name__ == "__main__":
    B, N, D, Dy, T = 2, 128, 8, 4, 5
    sigma_x, sigma_y = 0.3, 0.5

    key = jax.random.PRNGKey(0)
    key, k_h, k_s0, k_proc, k_obs, k_pf = jax.random.split(key, 6)

    # deterministic model parameters
    A = 0.88 * jnp.eye(D, dtype=jnp.float32) \
        + 0.08 * jnp.roll(jnp.eye(D, dtype=jnp.float32), 1, axis=1)
    H = 0.5 * jax.random.normal(k_h, (Dy, D), jnp.float32)

    # Simulated_Object: ground-truth trajectory + observations (plain JAX glue)
    s = jax.random.normal(k_s0, (B, D), jnp.float32)
    proc_eps = jax.random.normal(k_proc, (T, B, D), jnp.float32)
    obs_eps = jax.random.normal(k_obs, (T + 1, B, Dy), jnp.float32)
    obs = [s @ H.T + sigma_y * obs_eps[0]]
    for t in range(T):
        s = s @ A.T + sigma_x * proc_eps[t]
        obs.append(s @ H.T + sigma_y * obs_eps[t + 1])
    observations = jnp.stack(obs, axis=0)                         # (T+1, B, Dy)

    pf = DifferentiableParticleFilterPallas(
        n_particles=N, state_dim=D, obs_dim=Dy, A=A, H=H,
        sigma_x=sigma_x, sigma_y=sigma_y)

    results = pf.forward(observations, iterations=T, key=k_pf)
    jax.block_until_ready(results)

    # sanity: normalised weights sum to 1, ESS in (0, N], stats finite
    wsum = jnp.sum(jnp.exp(results["log_normalised_weights"]), axis=1)
    assert jnp.allclose(wsum, 1.0, atol=1e-3), wsum
    ess = results["ESS"]
    assert bool(jnp.all(ess > 0.0)) and bool(jnp.all(ess <= N + 1e-3)), ess
    assert bool(jnp.all(jnp.isfinite(results["posterior_means"])))

    print("KERNEL_OK")
</pallas_src>

<mosaic_0001>
module attributes {stable_mosaic.version = 11 : i64} {
  func.func @_pf_kernel(%arg0: i32, %arg1: memref<12xf32, #tpu.memory_space<smem>>, %arg2: memref<48xf32, #tpu.memory_space<smem>>, %arg3: memref<8x8xf32, #tpu.memory_space<vmem>>, %arg4: memref<8x8xf32, #tpu.memory_space<vmem>>, %arg5: memref<1x6x8x128xf32, #tpu.memory_space<vmem>>, %arg6: memref<1x8x128xf32, #tpu.memory_space<vmem>>, %arg7: memref<1x2x128xf32, #tpu.memory_space<vmem>>, %arg8: memref<1x6x128xf32, #tpu.memory_space<vmem>>) attributes {dimension_semantics = [#tpu.dimension_semantics<parallel>], iteration_bounds = array<i64: 2>, scalar_prefetch = 0 : i64, scratch_operands = 0 : i64, tpu.core_type = #tpu.core_type<tc>, window_params = [{transform_indices = @transform_0, window_bounds = array<i64: 12>}, {transform_indices = @transform_1, window_bounds = array<i64: 48>}, {pipeline_mode = #tpu.pipeline_mode<synchronous>, transform_indices = @transform_2, window_bounds = array<i64: 8, 8>}, {pipeline_mode = #tpu.pipeline_mode<synchronous>, transform_indices = @transform_3, window_bounds = array<i64: 8, 8>}, {transform_indices = @transform_4, window_bounds = array<i64: 1, 6, 8, 128>}, {transform_indices = @transform_5, window_bounds = array<i64: 1, 8, 128>}, {transform_indices = @transform_6, window_bounds = array<i64: 1, 2, 128>}, {transform_indices = @transform_7, window_bounds = array<i64: 1, 6, 128>}]} {
    %c0 = arith.constant 0 : index
    %c0_0 = arith.constant 0 : index
    %0 = vector.load %arg3[%c0, %c0_0] : memref<8x8xf32, #tpu.memory_space<vmem>>, vector<8x8xf32>
    %c0_1 = arith.constant 0 : index
    %c0_2 = arith.constant 0 : index
    %1 = vector.load %arg4[%c0_1, %c0_2] : memref<8x8xf32, #tpu.memory_space<vmem>>, vector<8x8xf32>
    %2 = tpu.iota {dimensions = array<i32: 1>} : vector<1x128xi32>
    %3 = arith.sitofp %2 : vector<1x128xi32> to vector<1x128xf32>
    %4 = tpu.iota {dimensions = array<i32: 0>} : vector<128x1xi32>
    %5 = arith.sitofp %4 : vector<128x1xi32> to vector<128x1xf32>
    %cst = arith.constant 1.270000e+02 : f32
    %6 = vector.broadcast %cst : f32 to vector<128x1xf32>
    %7 = arith.cmpf oeq, %5, %6 : vector<128x1xf32>
    %8 = tpu.iota {dimensions = array<i32: 1>} : vector<128x128xi32>
    %9 = tpu.iota {dimensions = array<i32: 0>} : vector<128x128xi32>
    %10 = arith.cmpi sle, %8, %9 : vector<128x128xi32>
    %cst_3 = arith.constant 0.000000e+00 : f32
    %11 = vector.broadcast %cst_3 : f32 to vector<6x128xf32>
    %c0_4 = arith.constant 0 : index
    %c0_5 = arith.constant 0 : index
    %c0_6 = arith.constant 0 : index
    %12 = vector.load %arg8[%c0_4, %c0_5, %c0_6] : memref<1x6x128xf32, #tpu.memory_space<vmem>>, vector<1x6x128xf32>
    %13 = vector.shape_cast %12 : vector<1x6x128xf32> to vector<6x128xf32>
    %14 = vector.shape_cast %11 : vector<6x128xf32> to vector<1x6x128xf32>
    tpu.vector_store %arg8[%c0_4, %c0_5, %c0_6], %14 {strides = array<i32>} : memref<1x6x128xf32, #tpu.memory_space<vmem>>, vector<1x6x128xf32>,
    %c0_7 = arith.constant 0 : index
    %c0_8 = arith.constant 0 : index
    %c0_9 = arith.constant 0 : index
    %c0_10 = arith.constant 0 : index
    %15 = vector.load %arg5[%c0_7, %c0_8, %c0_9, %c0_10] : memref<1x6x8x128xf32, #tpu.memory_space<vmem>>, vector<1x1x8x128xf32>
    %16 = vector.shape_cast %15 : vector<1x1x8x128xf32> to vector<8x128xf32>
    %cst_11 = arith.constant 0.000000e+00 : f32
    %17 = vector.broadcast %cst_11 : f32 to vector<1x128xf32>
    %cst_12 = arith.constant dense<0.000000e+00> : vector<8x128xf32>
    %18 = tpu.matmul %1, %16, %cst_12 {dimension_numbers = #tpu.dot_dimension_numbers<[1], [0], [0], [1], [0, 0, 1, 1], [], []>} : vector<8x8xf32>, vector<8x128xf32>, vector<8x128xf32> -> vector<8x128xf32>
    %c0_i32 = arith.constant 0 : i32
    %19 = arith.addi %c0_i32, %arg0 : i32
    %c4_i32 = arith.constant 4 : i32
    %20 = arith.muli %19, %c4_i32 : i32
    %cst_13 = arith.constant 0.000000e+00 : f32
    %21 = vector.broadcast %cst_13 : f32 to vector<1x128xf32>
    %22 = vector.extract_strided_slice %18 {offsets = [0, 0], sizes = [1, 128], strides = [1, 1]} : vector<8x128xf32> to vector<1x128xf32>
    %c0_i32_14 = arith.constant 0 : i32
    %23 = arith.addi %20, %c0_i32_14 : i32
    %24 = arith.index_cast %23 : i32 to index
    %25 = memref.load %arg2[%24] : memref<48xf32, #tpu.memory_space<smem>>
    %26 = vector.broadcast %25 : f32 to vector<1x128xf32>
    %27 = arith.subf %22, %26 : vector<1x128xf32>
    %28 = arith.mulf %27, %27 : vector<1x128xf32>
    %29 = arith.addf %21, %28 : vector<1x128xf32>
    %30 = vector.extract_strided_slice %18 {offsets = [1, 0], sizes = [1, 128], strides = [1, 1]} : vector<8x128xf32> to vector<1x128xf32>
    %c1_i32 = arith.constant 1 : i32
    %31 = arith.addi %20, %c1_i32 : i32
    %32 = arith.index_cast %31 : i32 to index
    %33 = memref.load %arg2[%32] : memref<48xf32, #tpu.memory_space<smem>>
    %34 = vector.broadcast %33 : f32 to vector<1x128xf32>
    %35 = arith.subf %30, %34 : vector<1x128xf32>
    %36 = arith.mulf %35, %35 : vector<1x128xf32>
    %37 = arith.addf %29, %36 : vector<1x128xf32>
    %38 = vector.extract_strided_slice %18 {offsets = [2, 0], sizes = [1, 128], strides = [1, 1]} : vector<8x128xf32> to vector<1x128xf32>
    %c2_i32 = arith.constant 2 : i32
    %39 = arith.addi %20, %c2_i32 : i32
    %40 = arith.index_cast %39 : i32 to index
    %41 = memref.load %arg2[%40] : memref<48xf32, #tpu.memory_space<smem>>
    %42 = vector.broadcast %41 : f32 to vector<1x128xf32>
    %43 = arith.subf %38, %42 : vector<1x128xf32>
    %44 = arith.mulf %43, %43 : vector<1x128xf32>
    %45 = arith.addf %37, %44 : vector<1x128xf32>
    %46 = vector.extract_strided_slice %18 {offsets = [3, 0], sizes = [1, 128], strides = [1, 1]} : vector<8x128xf32> to vector<1x128xf32>
    %c3_i32 = arith.constant 3 : i32
    %47 = arith.addi %20, %c3_i32 : i32
    %48 = arith.index_cast %47 : i32 to index
    %49 = memref.load %arg2[%48] : memref<48xf32, #tpu.memory_space<smem>>
    %50 = vector.broadcast %49 : f32 to vector<1x128xf32>
    %51 = arith.subf %46, %50 : vector<1x128xf32>
    %52 = arith.mulf %51, %51 : vector<1x128xf32>
    %53 = arith.addf %45, %52 : vector<1x128xf32>
    %cst_15 = arith.constant -2.000000e+00 : f32
    %54 = vector.broadcast %cst_15 : f32 to vector<1x128xf32>
    %55 = arith.mulf %54, %53 : vector<1x128xf32>
    %56 = arith.addf %17, %55 : vector<1x128xf32>
    %cst_16 = arith.constant -0.9031654 : f32
    %57 = vector.broadcast %cst_16 : f32 to vector<1x128xf32>
    %58 = arith.addf %56, %57 : vector<1x128xf32>
    %cst_17 = arith.constant dense<0xFF800000> : vector<1xf32>
    %59 = vector.multi_reduction <maximumf>, %58, %cst_17 [1] : vector<1x128xf32> to vector<1xf32>
    %60 = vector.shape_cast %59 : vector<1xf32> to vector<1x1xf32>
    %61 = vector.broadcast %60 : vector<1x1xf32> to vector<1x128xf32>
    %62 = arith.subf %58, %61 : vector<1x128xf32>
    %63 = math.exp %62 : vector<1x128xf32>
    %cst_18 = arith.constant dense<0.000000e+00> : vector<1xf32>
    %64 = vector.multi_reduction <add>, %63, %cst_18 [1] : vector<1x128xf32> to vector<1xf32>
    %65 = vector.shape_cast %64 : vector<1xf32> to vector<1x1xf32>
    %66 = math.log %65 : vector<1x1xf32>
    %67 = arith.addf %60, %66 : vector<1x1xf32>
    %68 = vector.broadcast %67 : vector<1x1xf32> to vector<1x128xf32>
    %69 = arith.subf %58, %68 : vector<1x128xf32>
    %70 = math.exp %69 : vector<1x128xf32>
    %71 = tpu.transpose %16, [1, 0] : vector<8x128xf32> -> vector<128x8xf32>
    %cst_19 = arith.constant dense<0.000000e+00> : vector<1x8xf32>
    %72 = tpu.matmul %70, %71, %cst_19 {dimension_numbers = #tpu.dot_dimension_numbers<[1], [0], [0], [1], [0, 0, 1, 1], [], []>} : vector<1x128xf32>, vector<128x8xf32>, vector<1x8xf32> -> vector<1x8xf32>
    %73 = arith.mulf %70, %70 : vector<1x128xf32>
    %cst_20 = arith.constant dense<0.000000e+00> : vector<1xf32>
    %74 = vector.multi_reduction <add>, %73, %cst_20 [1] : vector<1x128xf32> to vector<1xf32>
    %75 = vector.shape_cast %74 : vector<1xf32> to vector<1x1xf32>
    %cst_21 = arith.constant 1.000000e+00 : f32
    %76 = vector.broadcast %cst_21 : f32 to vector<1x1xf32>
    %77 = arith.divf %76, %75 : vector<1x1xf32>
    %c0_22 = arith.constant 0 : index
    %c0_23 = arith.constant 0 : index
    %c0_24 = arith.constant 0 : index
    %78 = vector.load %arg8[%c0_22, %c0_23, %c0_24] : memref<1x6x128xf32, #tpu.memory_space<vmem>>, vector<1x1x8xf32>
    %79 = vector.shape_cast %78 : vector<1x1x8xf32> to vector<1x8xf32>
    %80 = vector.shape_cast %72 : vector<1x8xf32> to vector<1x1x8xf32>
    tpu.vector_store %arg8[%c0_22, %c0_23, %c0_24], %80 {strides = array<i32>} : memref<1x6x128xf32, #tpu.memory_space<vmem>>, vector<1x1x8xf32>,
    %c0_25 = arith.constant 0 : index
    %c0_26 = arith.constant 0 : index
    %c8 = arith.constant 8 : index
    %81 = vector.load %arg8[%c0_25, %c0_26, %c8] : memref<1x6x128xf32, #tpu.memory_space<vmem>>, vector<1x1x1xf32>
    %82 = vector.shape_cast %81 : vector<1x1x1xf32> to vector<1x1xf32>
    %83 = vector.shape_cast %77 : vector<1x1xf32> to vector<1x1x1xf32>
    tpu.vector_store %arg8[%c0_25, %c0_26, %c8], %83 {strides = array<i32>} : memref<1x6x128xf32, #tpu.memory_space<vmem>>, vector<1x1x1xf32>,
    %cst_27 = arith.constant 7.812500e-03 : f32
    %cst_28 = arith.constant -2.000000e+00 : f32
    %c1_i32_29 = arith.constant 1 : i32
    %c5_i32 = arith.constant 5 : i32
    %84 = arith.addi %c1_i32_29, %c5_i32 : i32
    %c1_i32_30 = arith.constant 1 : i32
    %85:3 = scf.for %arg9 = %c1_i32_29 to %84 step %c1_i32_30 iter_args(%arg10 = %16, %arg11 = %58, %arg12 = %69) -> (vector<8x128xf32>, vector<1x128xf32>, vector<1x128xf32>)  : i32 {
      %95 = math.exp %arg12 : vector<1x128xf32>
      %cst_40 = arith.constant 0.000000e+00 : f32
      %96 = vector.shape_cast %95 : vector<1x128xf32> to vector<1x128xf32>
      %97 = vector.broadcast %96 : vector<1x128xf32> to vector<128x128xf32>
      %98 = vector.broadcast %cst_40 : f32 to vector<128x128xf32>
      %99 = arith.select %10, %97, %98 : vector<128x128xi1>, vector<128x128xf32>
      %cst_41 = arith.constant dense<0.000000e+00> : vector<128xf32>
      %100 = vector.multi_reduction <add>, %99, %cst_41 [1] : vector<128x128xf32> to vector<128xf32>
      %101 = vector.shape_cast %100 : vector<128xf32> to vector<128x1xf32>
      %cst_42 = arith.constant 2.000000e+00 : f32
      %102 = vector.broadcast %cst_42 : f32 to vector<128x1xf32>
      %103 = arith.select %7, %102, %101 : vector<128x1xi1>, vector<128x1xf32>
      %c6_i32 = arith.constant 6 : i32
      %104 = arith.muli %arg0, %c6_i32 : i32
      %105 = arith.addi %104, %arg9 : i32
      %106 = arith.index_cast %105 : i32 to index
      %107 = memref.load %arg1[%106] : memref<12xf32, #tpu.memory_space<smem>>
      %108 = vector.broadcast %107 : f32 to vector<1x128xf32>
      %109 = arith.addf %108, %3 : vector<1x128xf32>
      %110 = vector.broadcast %cst_27 : f32 to vector<1x128xf32>
      %111 = arith.mulf %109, %110 : vector<1x128xf32>
      %112 = vector.broadcast %103 : vector<128x1xf32> to vector<128x128xf32>
      %113 = vector.broadcast %111 : vector<1x128xf32> to vector<128x128xf32>
      %114 = arith.cmpf olt, %112, %113 : vector<128x128xf32>
      %115 = arith.extui %114 : vector<128x128xi1> to vector<128x128xi32>
      %116 = arith.sitofp %115 : vector<128x128xi32> to vector<128x128xf32>
      %cst_43 = arith.constant dense<0.000000e+00> : vector<128xf32>
      %117 = vector.multi_reduction <add>, %116, %cst_43 [0] : vector<128x128xf32> to vector<128xf32>
      %118 = vector.shape_cast %117 : vector<128xf32> to vector<1x128xf32>
      %119 = vector.broadcast %5 : vector<128x1xf32> to vector<128x128xf32>
      %120 = vector.broadcast %118 : vector<1x128xf32> to vector<128x128xf32>
      %121 = arith.cmpf oeq, %119, %120 : vector<128x128xf32>
      %122 = arith.extui %121 : vector<128x128xi1> to vector<128x128xi32>
      %123 = arith.sitofp %122 : vector<128x128xi32> to vector<128x128xf32>
      %cst_44 = arith.constant dense<0.000000e+00> : vector<8x128xf32>
      %124 = tpu.matmul %arg10, %123, %cst_44 {dimension_numbers = #tpu.dot_dimension_numbers<[1], [0], [0], [1], [0, 0, 1, 1], [], []>} : vector<8x128xf32>, vector<128x128xf32>, vector<8x128xf32> -> vector<8x128xf32>
      %cst_45 = arith.constant dense<0.000000e+00> : vector<8x128xf32>
      %125 = tpu.matmul %0, %124, %cst_45 {dimension_numbers = #tpu.dot_dimension_numbers<[1], [0], [0], [1], [0, 0, 1, 1], [], []>} : vector<8x8xf32>, vector<8x128xf32>, vector<8x128xf32> -> vector<8x128xf32>
      %c0_46 = arith.constant 0 : index
      %126 = arith.index_cast %arg9 : i32 to index
      %c0_47 = arith.constant 0 : index
      %c0_48 = arith.constant 0 : index
      %127 = vector.load %arg5[%c0_46, %126, %c0_47, %c0_48] : memref<1x6x8x128xf32, #tpu.memory_space<vmem>>, vector<1x1x8x128xf32>
      %128 = vector.shape_cast %127 : vector<1x1x8x128xf32> to vector<8x128xf32>
      %cst_49 = arith.constant 3.000000e-01 : f32
      %129 = vector.broadcast %cst_49 : f32 to vector<8x128xf32>
      %130 = arith.mulf %129, %128 : vector<8x128xf32>
      %131 = arith.addf %125, %130 : vector<8x128xf32>
      %cst_50 = arith.constant -4.85203028 : f32
      %132 = vector.broadcast %cst_50 : f32 to vector<1x128xf32>
      %cst_51 = arith.constant dense<0.000000e+00> : vector<8x128xf32>
      %133 = tpu.matmul %1, %131, %cst_51 {dimension_numbers = #tpu.dot_dimension_numbers<[1], [0], [0], [1], [0, 0, 1, 1], [], []>} : vector<8x8xf32>, vector<8x128xf32>, vector<8x128xf32> -> vector<8x128xf32>
      %c2_i32_52 = arith.constant 2 : i32
      %134 = arith.muli %arg9, %c2_i32_52 : i32
      %135 = arith.addi %134, %arg0 : i32
      %c4_i32_53 = arith.constant 4 : i32
      %136 = arith.muli %135, %c4_i32_53 : i32
      %cst_54 = arith.constant 0.000000e+00 : f32
      %137 = vector.broadcast %cst_54 : f32 to vector<1x128xf32>
      %138 = vector.extract_strided_slice %133 {offsets = [0, 0], sizes = [1, 128], strides = [1, 1]} : vector<8x128xf32> to vector<1x128xf32>
      %c0_i32_55 = arith.constant 0 : i32
      %139 = arith.addi %136, %c0_i32_55 : i32
      %140 = arith.index_cast %139 : i32 to index
      %141 = memref.load %arg2[%140] : memref<48xf32, #tpu.memory_space<smem>>
      %142 = vector.broadcast %141 : f32 to vector<1x128xf32>
      %143 = arith.subf %138, %142 : vector<1x128xf32>
      %144 = arith.mulf %143, %143 : vector<1x128xf32>
      %145 = arith.addf %137, %144 : vector<1x128xf32>
      %146 = vector.extract_strided_slice %133 {offsets = [1, 0], sizes = [1, 128], strides = [1, 1]} : vector<8x128xf32> to vector<1x128xf32>
      %c1_i32_56 = arith.constant 1 : i32
      %147 = arith.addi %136, %c1_i32_56 : i32
      %148 = arith.index_cast %147 : i32 to index
      %149 = memref.load %arg2[%148] : memref<48xf32, #tpu.memory_space<smem>>
      %150 = vector.broadcast %149 : f32 to vector<1x128xf32>
      %151 = arith.subf %146, %150 : vector<1x128xf32>
      %152 = arith.mulf %151, %151 : vector<1x128xf32>
      %153 = arith.addf %145, %152 : vector<1x128xf32>
      %154 = vector.extract_strided_slice %133 {offsets = [2, 0], sizes = [1, 128], strides = [1, 1]} : vector<8x128xf32> to vector<1x128xf32>
      %c2_i32_57 = arith.constant 2 : i32
      %155 = arith.addi %136, %c2_i32_57 : i32
      %156 = arith.index_cast %155 : i32 to index
      %157 = memref.load %arg2[%156] : memref<48xf32, #tpu.memory_space<smem>>
      %158 = vector.broadcast %157 : f32 to vector<1x128xf32>
      %159 = arith.subf %154, %158 : vector<1x128xf32>
      %160 = arith.mulf %159, %159 : vector<1x128xf32>
      %161 = arith.addf %153, %160 : vector<1x128xf32>
      %162 = vector.extract_strided_slice %133 {offsets = [3, 0], sizes = [1, 128], strides = [1, 1]} : vector<8x128xf32> to vector<1x128xf32>
      %c3_i32_58 = arith.constant 3 : i32
      %163 = arith.addi %136, %c3_i32_58 : i32
      %164 = arith.index_cast %163 : i32 to index
      %165 = memref.load %arg2[%164] : memref<48xf32, #tpu.memory_space<smem>>
      %166 = vector.broadcast %165 : f32 to vector<1x128xf32>
      %167 = arith.subf %162, %166 : vector<1x128xf32>
      %168 = arith.mulf %167, %167 : vector<1x128xf32>
      %169 = arith.addf %161, %168 : vector<1x128xf32>
      %170 = vector.broadcast %cst_28 : f32 to vector<1x128xf32>
      %171 = arith.mulf %170, %169 : vector<1x128xf32>
      %172 = arith.addf %132, %171 : vector<1x128xf32>
      %cst_59 = arith.constant -0.9031654 : f32
      %173 = vector.broadcast %cst_59 : f32 to vector<1x128xf32>
      %174 = arith.addf %172, %173 : vector<1x128xf32>
      %cst_60 = arith.constant dense<0xFF800000> : vector<1xf32>
      %175 = vector.multi_reduction <maximumf>, %174, %cst_60 [1] : vector<1x128xf32> to vector<1xf32>
      %176 = vector.shape_cast %175 : vector<1xf32> to vector<1x1xf32>
      %177 = vector.broadcast %176 : vector<1x1xf32> to vector<1x128xf32>
      %178 = arith.subf %174, %177 : vector<1x128xf32>
      %179 = math.exp %178 : vector<1x128xf32>
      %cst_61 = arith.constant dense<0.000000e+00> : vector<1xf32>
      %180 = vector.multi_reduction <add>, %179, %cst_61 [1] : vector<1x128xf32> to vector<1xf32>
      %181 = vector.shape_cast %180 : vector<1xf32> to vector<1x1xf32>
      %182 = math.log %181 : vector<1x1xf32>
      %183 = arith.addf %176, %182 : vector<1x1xf32>
      %184 = vector.broadcast %183 : vector<1x1xf32> to vector<1x128xf32>
      %185 = arith.subf %174, %184 : vector<1x128xf32>
      %186 = math.exp %185 : vector<1x128xf32>
      %187 = tpu.transpose %131, [1, 0] : vector<8x128xf32> -> vector<128x8xf32>
      %cst_62 = arith.constant dense<0.000000e+00> : vector<1x8xf32>
      %188 = tpu.matmul %186, %187, %cst_62 {dimension_numbers = #tpu.dot_dimension_numbers<[1], [0], [0], [1], [0, 0, 1, 1], [], []>} : vector<1x128xf32>, vector<128x8xf32>, vector<1x8xf32> -> vector<1x8xf32>
      %189 = arith.mulf %186, %186 : vector<1x128xf32>
      %cst_63 = arith.constant dense<0.000000e+00> : vector<1xf32>
      %190 = vector.multi_reduction <add>, %189, %cst_63 [1] : vector<1x128xf32> to vector<1xf32>
      %191 = vector.shape_cast %190 : vector<1xf32> to vector<1x1xf32>
      %cst_64 = arith.constant 1.000000e+00 : f32
      %192 = vector.broadcast %cst_64 : f32 to vector<1x1xf32>
      %193 = arith.divf %192, %191 : vector<1x1xf32>
      %c0_65 = arith.constant 0 : index
      %194 = arith.index_cast %arg9 : i32 to index
      %c0_66 = arith.constant 0 : index
      %195 = vector.load %arg8[%c0_65, %194, %c0_66] : memref<1x6x128xf32, #tpu.memory_space<vmem>>, vector<1x1x8xf32>
      %196 = vector.shape_cast %195 : vector<1x1x8xf32> to vector<1x8xf32>
      %197 = vector.shape_cast %188 : vector<1x8xf32> to vector<1x1x8xf32>
      tpu.vector_store %arg8[%c0_65, %194, %c0_66], %197 {strides = array<i32>} : memref<1x6x128xf32, #tpu.memory_space<vmem>>, vector<1x1x8xf32>,
      %c0_67 = arith.constant 0 : index
      %198 = arith.index_cast %arg9 : i32 to index
      %c8_68 = arith.constant 8 : index
      %199 = vector.load %arg8[%c0_67, %198, %c8_68] : memref<1x6x128xf32, #tpu.memory_space<vmem>>, vector<1x1x1xf32>
      %200 = vector.shape_cast %199 : vector<1x1x1xf32> to vector<1x1xf32>
      %201 = vector.shape_cast %193 : vector<1x1xf32> to vector<1x1x1xf32>
      tpu.vector_store %arg8[%c0_67, %198, %c8_68], %201 {strides = array<i32>} : memref<1x6x128xf32, #tpu.memory_space<vmem>>, vector<1x1x1xf32>,
      scf.yield %131, %174, %185 : vector<8x128xf32>, vector<1x128xf32>, vector<1x128xf32>
    }
    %c5_i32_31 = arith.constant 5 : i32
    %c0_32 = arith.constant 0 : index
    %c0_33 = arith.constant 0 : index
    %c0_34 = arith.constant 0 : index
    %86 = vector.load %arg6[%c0_32, %c0_33, %c0_34] : memref<1x8x128xf32, #tpu.memory_space<vmem>>, vector<1x8x128xf32>
    %87 = vector.shape_cast %86 : vector<1x8x128xf32> to vector<8x128xf32>
    %88 = vector.shape_cast %85#0 : vector<8x128xf32> to vector<1x8x128xf32>
    tpu.vector_store %arg6[%c0_32, %c0_33, %c0_34], %88 {strides = array<i32>} : memref<1x8x128xf32, #tpu.memory_space<vmem>>, vector<1x8x128xf32>,
    %c0_35 = arith.constant 0 : index
    %c0_36 = arith.constant 0 : index
    %c0_37 = arith.constant 0 : index
    %89 = vector.load %arg7[%c0_35, %c0_36, %c0_37] : memref<1x2x128xf32, #tpu.memory_space<vmem>>, vector<1x1x128xf32>
    %90 = vector.shape_cast %89 : vector<1x1x128xf32> to vector<1x128xf32>
    %91 = vector.shape_cast %85#1 : vector<1x128xf32> to vector<1x1x128xf32>
    tpu.vector_store %arg7[%c0_35, %c0_36, %c0_37], %91 {strides = array<i32>} : memref<1x2x128xf32, #tpu.memory_space<vmem>>, vector<1x1x128xf32>,
    %c0_38 = arith.constant 0 : index
    %c1 = arith.constant 1 : index
    %c0_39 = arith.constant 0 : index
    %92 = vector.load %arg7[%c0_38, %c1, %c0_39] : memref<1x2x128xf32, #tpu.memory_space<vmem>>, vector<1x1x128xf32>
    %93 = vector.shape_cast %92 : vector<1x1x128xf32> to vector<1x128xf32>
    %94 = vector.shape_cast %85#2 : vector<1x128xf32> to vector<1x1x128xf32>
    tpu.vector_store %arg7[%c0_38, %c1, %c0_39], %94 {strides = array<i32>} : memref<1x2x128xf32, #tpu.memory_space<vmem>>, vector<1x1x128xf32>,
    return
  }
  func.func @transform_0(%arg0: i32) -> i32 {
    %c0_i32 = arith.constant 0 : i32
    %c0_i32_0 = arith.constant 0 : i32
    return %c0_i32 : i32
  }
  func.func @transform_1(%arg0: i32) -> i32 {
    %c0_i32 = arith.constant 0 : i32
    %c0_i32_0 = arith.constant 0 : i32
    return %c0_i32 : i32
  }
  func.func @transform_2(%arg0: i32) -> (i32, i32) {
    %c0_i32 = arith.constant 0 : i32
    %c0_i32_0 = arith.constant 0 : i32
    %c0_i32_1 = arith.constant 0 : i32
    return %c0_i32, %c0_i32_0 : i32, i32
  }
  func.func @transform_3(%arg0: i32) -> (i32, i32) {
    %c0_i32 = arith.constant 0 : i32
    %c0_i32_0 = arith.constant 0 : i32
    %c0_i32_1 = arith.constant 0 : i32
    return %c0_i32, %c0_i32_0 : i32, i32
  }
  func.func @transform_4(%arg0: i32) -> (i32, i32, i32, i32) {
    %c0_i32 = arith.constant 0 : i32
    %c0_i32_0 = arith.constant 0 : i32
    %c0_i32_1 = arith.constant 0 : i32
    %c0_i32_2 = arith.constant 0 : i32
    return %arg0, %c0_i32, %c0_i32_0, %c0_i32_1 : i32, i32, i32, i32
  }
  func.func @transform_5(%arg0: i32) -> (i32, i32, i32) {
    %c0_i32 = arith.constant 0 : i32
    %c0_i32_0 = arith.constant 0 : i32
    %c0_i32_1 = arith.constant 0 : i32
    return %arg0, %c0_i32, %c0_i32_0 : i32, i32, i32
  }
  func.func @transform_6(%arg0: i32) -> (i32, i32, i32) {
    %c0_i32 = arith.constant 0 : i32
    %c0_i32_0 = arith.constant 0 : i32
    %c0_i32_1 = arith.constant 0 : i32
    return %arg0, %c0_i32, %c0_i32_0 : i32, i32, i32
  }
  func.func @transform_7(%arg0: i32) -> (i32, i32, i32) {
    %c0_i32 = arith.constant 0 : i32
    %c0_i32_0 = arith.constant 0 : i32
    %c0_i32_1 = arith.constant 0 : i32
    return %arg0, %c0_i32, %c0_i32_0 : i32, i32, i32
  }
}

</mosaic_0001>

<bundles_post_ra>
// kernel: tpu_custom_call.1
= control target key start
LH: loop header
LB: loop body
LE: loop exit
PB: predicated region body
PF: predicated region fallthrough
CT: control target
= control target key end

     0   :  { %s2708_s0 = inlined_call_operand.hbm [shape: f32[12], index: 0, kind: input, shape index: {}]   ;;  %s2709_s1 = inlined_call_operand.vmem [shape: f32[48], index: 1, kind: input, shape index: {}]   ;;  %s2710_s2 = inlined_call_operand.hbm [shape: f32[8,8], index: 2, kind: input, shape index: {}]   ;;  %s2711_s3 = inlined_call_operand.hbm [shape: f32[8,8], index: 3, kind: input, shape index: {}]   ;;  %s2712_s4 = inlined_call_operand.hbm [shape: f32[2,6,8,128], index: 4, kind: input, shape index: {}]   ;;  %s2713_s5 = inlined_call_operand.hbm [shape: f32[2,8,128], index: 5, kind: output, shape index: {0}]   ;;  %s2714_s6 = inlined_call_operand.hbm [shape: f32[2,2,128], index: 6, kind: output, shape index: {1}]   ;;  %s2715_s7 = inlined_call_operand.vmem [shape: f32[2,6,128], index: 7, kind: output, shape index: {2}]  }
   0x1   :  { %2737 = sst [smem:[#allocation22_spill]] %s2708_s0 }
   0x2   :  { %2738 = sst [smem:[#allocation23_spill]] %s2709_s1 }
   0x3   :  { %13 = vsyncpa [#allocation5], 0 }
   0x4   :  { %14 = vsyncpa [#allocation6], 0 }
   0x5   :  { %15 = vsyncpa [#allocation3], 0 }
   0x6   :  { %16 = vsyncpa [#allocation10], 0 }
   0x7   :  { %17 = vsyncpa [#allocation4], 0 }
   0x8   :  { %19 = vsyncpa [#allocation4 + $0x1], 0 }
   0x9   :  { %20 = vsyncpa [#allocation14], 0 }
   0xa   :  { %22 = vsyncpa [#allocation14 + $0x1], 0  ;;  %s2027_s24 = smov 0   ;;  %s2029_s25 = smov 0  }
   0xb   :  { %s2031_s26 = smov 0   ;;  %s2033_s27 = smov 0  }
   0xc LB: > { %s2048_s28 = sadd.s32 4294967295, %s1959_s27   ;;  %s1423_s29 = sadd.s32 4294967294, %s1959_s27   ;;  %s1959_s27 = sphi %s2033_s27, %s2842_s27   ;;  %s1955_s26 = sphi %s2031_s26, %s2841_s26   ;;  %s1951_s25 = sphi %s2029_s25, %s2840_s25   ;;  %s1947_s24 = sphi %s2027_s24, %s2839_s24  }
   0xd   : > { %p132_p0 = scmp.ne.s32.totalorder %s1951_s25, %s1947_s24  ;;  %p2716_p1 = scmp.eq.s32.totalorder %s2048_s28, 0 }
   0xe   : > { %p162_p3 = scmp.eq.s32.totalorder %s1423_s29, 1  ;;  %p1424_p5 = scmp.ge.s32.totalorder %s1959_s27, 1 }
   0xf   : > { %p2057_p4 = por %p2716_p1, %p132_p0  ;;  %p221_p7 = scmp.lt.s32.totalorder %s1959_s27, 3 }
  0x10   : > { %p2062_p6 = por %p162_p3, %p132_p0  ;;  %s1973_s10 = smov [#allocation8]  }
  0x11   : > { %s2739_s30 = scalar_select %p2057_p4, 1, 0 }
  0x12   : > { %s2740_s8 = scalar_select %p2062_p6, 1, 0 }
  0x13   : > { %p2067_p8 = pnand %p1424_p5, %p221_p7  ;;  %s254_s11 = sshll.u32 %s1973_s10, 4  ;;  %s255_s11 = int_to_ptr.vmem [resolvable:$true] %s254_s11 }
  0x14   : > { %s2742_s1 = sld [smem:[#allocation23_spill]]  ;;  %s1974_s16 = smov [#allocation9]  }
  0x15   : > { %s2741_s9 = scalar_select %p2067_p8, 1, 0 }
  0x16   : > { %p1612_p10 = pneg %p2067_p8  ;;  %s265_s17 = sshll.u32 %s1974_s16, 4  ;;  %s266_s17 = int_to_ptr.vmem [resolvable:$true] %s265_s17 }
  0x17   : > { %s1742_s18 = scalar_lea.vmem %s255_s11, 128  ;;  %p1750_p5 = scmp.lt.s32.totalorder %s255_s11, %s255_s11 }
  0x18   : > { %p2079_p11 = pnand %p1612_p10, %p2716_p1  ;;  %p1743_p13 = scmp.ne.s32.totalorder %s255_s11, %s1742_s18 }
  0x19   : > { %p1751_p7 = scmp.lt.s32.totalorder %s1742_s18, %s1742_s18 }
  0x1a   : > { %s243_s14 = sshll.u32 %s2742_s1, 4  ;;  %p1733_p12 = pneg %p2079_p11  ;;  %s244_s14 = int_to_ptr.vmem [resolvable:$true] %s243_s14 }
  0x1b   : > { %p1752_p9 = por %p1751_p7, %p1750_p5 }
  0x1c   : > { %p1745_p0 = pnand %p1743_p13, %p1733_p12 }
  0x1e   : > { %p1746_p3 = pneg %p1745_p0 }
  0x20   : > { %p1753_p10 = pnand %p1752_p9, %p1746_p3 }
  0x22   : > { %1756 = shalt.err (!%p1753_p10)
}
  0x23   : > { %1621 = dma.hbm_to_vmem [thread:$0]  (!%p2079_p11), %s2710_s2, 128, %s255_s11, [#allocation3]  }
  0x24   : > { %s1975_s21 = smov [#allocation2]   ;;  %s2744_s0 = sld [smem:[#allocation22_spill]] }
  0x25   : > { %s1768_s29 = scalar_lea.vmem %s244_s14, 16  ;;  %p1776_p3 = scmp.lt.s32.totalorder %s244_s14, %s244_s14 }
  0x26   : > { %p1769_p13 = scmp.ne.s32.totalorder %s244_s14, %s1768_s29  ;;  %p1777_p5 = scmp.lt.s32.totalorder %s1768_s29, %s1768_s29 }
  0x28   : > { %p1771_p9 = pnand %p1769_p13, %p1733_p12  ;;  %p1778_p7 = por %p1777_p5, %p1776_p3 }
  0x2a   : > { %1615 = dma.hbm_to_smem (!%p2079_p11), %s2744_s0, 16, %s1975_s21, [#allocation5]  }
  0x2b   : > { %p1772_p0 = pneg %p1771_p9 }
  0x2d   : > { %p1779_p10 = pnand %p1778_p7, %p1772_p0 }
  0x2f   : > { %1782 = shalt.err (!%p1779_p10)
}
  0x30   : > { %s1976_s10 = smov [#allocation7]   ;;  %s1794_s11 = scalar_lea.vmem %s266_s17, 128 }
  0x31   : > { %1618 = dma.vmem_to_smem (!%p2079_p11), %s244_s14, 16, %s1976_s10, [#allocation6]  }
  0x32   : > { %p1795_p1 = scmp.ne.s32.totalorder %s266_s17, %s1794_s11  ;;  %p1802_p4 = scmp.lt.s32.totalorder %s266_s17, %s266_s17 }
  0x33   : > { %p1803_p13 = scmp.lt.s32.totalorder %s1794_s11, %s1794_s11 }
  0x34   : > { %p1797_p2 = pnand %p1795_p1, %p1733_p12 }
  0x35   : > { %p1804_p9 = por %p1803_p13, %p1802_p4 }
  0x36   : > { %p1798_p6 = pneg %p1797_p2 }
  0x38   : > { %p1805_p8 = pnand %p1804_p9, %p1798_p6 }
  0x3a   : > { %1808 = shalt.err (!%p1805_p8)
}
  0x3b   : > { %1624 = dma.hbm_to_vmem [thread:$0]  (!%p2079_p11), %s2711_s3, 128, %s266_s17, [#allocation10]  }
  0x3c   : > { %s2112_s14 = sadd.s32 1, %s1959_s27   ;;  %s119_s15 = sadd.s32 1, %s1955_s26 }
  0x3d   : > { %s116_s16 = ssub.s32 %s1959_s27, %s2112_s14  ;;  %p126_p1 = scmp.ne.s32.totalorder %s1955_s26, %s1951_s25 }
  0x3e   : > { %p117_p2 = scmp.eq.s32.totalorder %s116_s16, 0  ;;  %p127_p4 = scmp.eq.s32.totalorder %s1959_s27, 0 }
  0x3f   : > { %p2745_p6 = scmp.eq.s32.totalorder %s2048_s28, 1  ;;  %p1640_p12 = scmp.lt.s32.totalorder %s1959_s27, 2 }
  0x40   : > { %s2128_s19 = scalar_select %p117_p2, %s1955_s26, %s119_s15  }
  0x41   : > { %p2122_p8 = por %p2745_p6, %p126_p1  ;;  %p128_p0 = por %p127_p4, %p126_p1 }
  0x42   : > { %s276_s20 = sand.u32 1, %s1959_s27   ;;  %s278_s21 = sand.u32 1, %s1955_s26  }
  0x43   : > { %s2746_s18 = scalar_select %p2122_p8, 1, 0 }
  0x44   : > { %s1587_s17 = smul.u32 48, %s278_s21  ;;  %p2132_p11 = pnand %p1640_p12, %p128_p0 }
  0x45   : > { %s1588_s23 = smul.u32 768, %s1959_s27  ;;  %s2144_s15 = scalar_lea.sflag [#allocation3], %s276_s20 }
  0x46   : > { %s280_s12 = scalar_lea.vmem [#allocation11], %s1587_s17  ;;  %p1811_p5 = pneg %p2132_p11 }
  0x47   : > { %s2140_s11 = scalar_lea.hbm %s2712_s4, %s1588_s23  ;;  %s287_s13 = sshll.u32 %s280_s12, 4  ;;  %s2142_s13 = int_to_ptr.vmem [resolvable:$true] %s287_s13 }
  0x48   : > { %s1809_s16 = scalar_lea.hbm %s2140_s11, 768  ;;  %s1814_s23 = scalar_lea.hbm %s2712_s4, 1536 }
  0x49   : > { %p1810_p3 = scmp.ne.s32.totalorder %s2140_s11, %s1809_s16  ;;  %p1815_p13 = scmp.lt.s32.totalorder %s2140_s11, %s2712_s4 }
  0x4a   : > { %p1816_p9 = scmp.lt.s32.totalorder %s1814_s23, %s1809_s16 }
  0x4b   : > { %p1812_p7 = pnand %p1811_p5, %p1810_p3 }
  0x4c   : > { %p1817_p1 = por %p1816_p9, %p1815_p13 }
  0x4d   : > { %p1813_p10 = pneg %p1812_p7 }
  0x4f   : > { %p1818_p2 = pnand %p1817_p1, %p1813_p10 }
  0x51   : > { %1821 = shalt.err (!%p1818_p2)
}
  0x52   : > { %s1822_s20 = scalar_lea.vmem %s2142_s13, 768  ;;  %s1977_s17 = smov [#allocation11]  }
  0x53   : > { %p1823_p4 = scmp.ne.s32.totalorder %s2142_s13, %s1822_s20  ;;  %s1827_s12 = sshll.u32 %s1977_s17, 4  ;;  %s1828_s12 = int_to_ptr.vmem [resolvable:$false] %s1827_s12 }
  0x54   : > { %s1829_s0 = scalar_lea.vmem %s1828_s12, 1536  ;;  %p1830_p0 = scmp.lt.s32.totalorder %s2142_s13, %s1828_s12 }
  0x55   : > { %p1825_p6 = pnand %p1823_p4, %p1811_p5  ;;  %p1831_p3 = scmp.lt.s32.totalorder %s1829_s0, %s1822_s20 }
  0x57   : > { %p1826_p12 = pneg %p1825_p6  ;;  %p1832_p7 = por %p1831_p3, %p1830_p0 }
  0x59   : > { %p1833_p8 = pnand %p1832_p7, %p1826_p12 }
  0x5b   : > { %1836 = shalt.err (!%p1833_p8)
}
  0x5c   : > { %s1978_s16 = smov 128   ;;  %s1979_s21 = smov 8  }
  0x5d   : > { %1628 = dma.hbm_to_vmem [thread:$0]  (!%p2132_p11), %s2140_s11, 768, %s2142_s13, %s2144_s15, %s1978_s16, %s1978_s16, %s1979_s21  }
  0x5e   : > { %p2748_p5 = scmp.ne.s32.totalorder %s2741_s9, 0 }
  0x5f   : > { %p2749_p10 = scmp.eq.s32.totalorder (!%p2748_p5), %s2048_s28, 0 }
  0x60   : > { %299 = sbr.rel (%p2748_p5) target bundleno = 2260 (0x8d4), region = 40 }
  0x65   : > { %1918 = dma.done.wait (%p2749_p10), [#allocation5], 16   ;;  %p2750_p13 = pmov %p2749_p10 }
  0x66   : > { %p2751_p9 = pmov %p2749_p10 }
  0x67   : > { %1920 = vsyncadd (%p2750_p13), [#allocation5], 4294967280 }
  0x68   : > { %1922 = dma.done.wait (%p2751_p9), [#allocation6], 16   ;;  %p2752_p8 = pmov %p2751_p9 }
  0x6a   : > { %1924 = vsyncadd (%p2752_p8), [#allocation6], 4294967280  ;;  %p2753_p1 = pmov %p2752_p8 }
  0x6c   : > { %1926 = dma.done.wait (%p2753_p1), [#allocation3], 128   ;;  %p2754_p11 = pmov %p2753_p1 }
  0x6d   : > { %p2755_p2 = pmov %p2753_p1 }
  0x6e   : > { %1928 = vsyncadd (%p2754_p11), [#allocation3], 4294967168 }
  0x6f   : > { %1930 = dma.done.wait (%p2755_p2), [#allocation10], 128   ;;  %p2756_p4 = pmov %p2753_p1 }
  0x70   : > { %s317_s9 = sand.u32 1, %s2048_s28   ;;  %s2185_s22 = sand.u32 1, %s1951_s25  }
  0x71   : > { %1932 = vsyncadd (%p2756_p4), [#allocation10], 4294967168  ;;  %s1589_s11 = smul.u32 48, %s2185_s22  ;;  %s318_s13 = scalar_lea.sflag [#allocation3], %s317_s9 }
  0x72   : > { %p2757_p6 = scmp.ne.s32.totalorder %s2739_s30, 0 }
  0x73   : > { %s2188_s15 = scalar_lea.vmem [#allocation11], %s1589_s11 }
  0x74   : > { %1934 = dma.done.wait (%p2757_p6), %s318_s13, 768  }
  0x75   : > { %1936 = vsyncadd (%p2757_p6), %s318_s13, 4294966528 }
  0x76   : > { %326 = sfence }
  0x77   : > { %s1436_s23 = sshll.u32 %s2185_s22, 3  ;;  %s1437_s29 = sshll.u32 %s2185_s22, 1  ;;  %v2196_v0 = vld [vmem:[#allocation8] sm:$0xff]  ;;  %v368_v1 = vlaneseq  ;;  %v1980_v3 = vmov 0.0   ;;  %vm1981_vm0 = vmmov 0   ;;  %v2203_v4 = vld [vmem:[#allocation9] sm:$0xff] }
  0x78   : > { %v2199_v2 = vld [vmem:[%s2188_s15] sm:$0xff]   ;;  %1527 = vmatprep.subr.mxu0 %v1980_v3  ;;  %1529 = vmatprep.mubr.msk.f32.mxu0 %vm1981_vm0, %v1980_v3  ;;  %vm2720_vm1 = vcmask 64512   ;;  %v2776_v48 = vmov 0  ;;  %v2778_v49 = vmov 0  ;;  %v2780_v50 = vmov 0  ;;  %s1440_s30 = sshll.u32 %s2048_s28, 2 }
  0x79   : > { %v2205_v5 = vand.u32 127, %v368_v1  ;;  %v2207_v6 = vshrl.u32 %v368_v1, 7  ;;  %1528 = vmatpush3.msra.mxu0 %v2199_v2  ;;  %1532 = vmatprep.subr.mxu1 %v1980_v3  ;;  %v2782_v51 = vmov 0  ;;  %v2784_v52 = vmov 0  ;;  %s518_s10 = sadd.s32 1, %s1440_s30  ;;  %s527_s20 = sadd.s32 2, %s1440_s30 }
  0x7a   : > { %1530 = vmatmul.mubr.msk.f32.vlgmr.msra.gmra.mxu0 %vm2720_vm1, %v2203_v4  ;;  %1533 = vmatpush3.xpose.msra.mxu1 %v2199_v2  ;;  %v2786_v53 = vmov 0  ;;  %v2788_v54 = vmov 0  ;;  %s513_s17 = sld [smem:[#allocation7 + %s1440_s30]]  ;;  %s536_s12 = sadd.s32 3, %s1440_s30 }
  0x7b   : > { %v370_v7 = vcvt.s32.f32 %v2205_v5  ;;  %v2216_v8 = vadd.s32 8, %v2207_v6  ;;  %v2219_v9 = vadd.s32 16, %v2207_v6  ;;  %v2222_v10 = vadd.s32 24, %v2207_v6  ;;  %1534 = vmatprep.mubr.msk.f32.mxu1 %vm1981_vm0, %v1980_v3  ;;  %s519_s0 = sld [smem:[#allocation7 + %s518_s10]]  ;;  %p362_p12 = scmp.lt.s32.totalorder %s2048_s28, 1 }
  0x7c   : > { %v2226_v11 = vadd.s32 32, %v2207_v6  ;;  %v2229_v12 = vadd.s32 40, %v2207_v6  ;;  %v2232_v13 = vadd.s32 48, %v2207_v6  ;;  %v2235_v14 = vadd.s32 56, %v2207_v6  ;;  %s528_s16 = sld [smem:[#allocation7 + %s527_s20]]  ;;  %s2424_s20 = scalar_lea.vmem [#allocation12], %s1436_s23 }
  0x7d   : > { %v2238_v15 = vadd.s32 64, %v2207_v6  ;;  %v2241_v16 = vadd.s32 72, %v2207_v6  ;;  %v2244_v17 = vadd.s32 80, %v2207_v6  ;;  %v2247_v18 = vadd.s32 88, %v2207_v6  ;;  %s537_s21 = sld [smem:[#allocation7 + %s536_s12]]  ;;  %s2435_s12 = smov 1  }
  0x7e   : > { %v2250_v19 = vadd.s32 96, %v2207_v6  ;;  %v2253_v20 = vadd.s32 104, %v2207_v6  ;;  %v2256_v21 = vadd.s32 112, %v2207_v6  ;;  %v2259_v22 = vadd.s32 120, %v2207_v6  ;;  %s363_s9 = scalar_select %p362_p12, %s2048_s28, 1 }
  0x7f   : > { %v2721_v23 = vcvt.s32.f32 %v2207_v6  ;;  %v2722_v24 = vcvt.s32.f32 %v2216_v8  ;;  %v2723_v25 = vcvt.s32.f32 %v2219_v9  ;;  %v2724_v26 = vcvt.s32.f32 %v2222_v10 }
  0x80   : > { %v2725_v27 = vcvt.s32.f32 %v2226_v11  ;;  %v2726_v28 = vcvt.s32.f32 %v2229_v12  ;;  %v2727_v29 = vcvt.s32.f32 %v2232_v13  ;;  %v2728_v30 = vcvt.s32.f32 %v2235_v14  ;;  %s1438_s11 = sshll.u32 %s363_s9, 3 }
  0x81   : > { %v2729_v31 = vcvt.s32.f32 %v2238_v15  ;;  %v2730_v32 = vcvt.s32.f32 %v2241_v16  ;;  %v2731_v33 = vcvt.s32.f32 %v2244_v17  ;;  %v2732_v34 = vcvt.s32.f32 %v2247_v18  ;;  %s2414_s10 = scalar_lea.vmem %s2715_s7, %s1438_s11 }
  0x82   : > { %v2733_v35 = vcvt.s32.f32 %v2250_v19  ;;  %v401_v36 = vcvt.s32.f32 %v2253_v20  ;;  %v402_v37 = vcvt.s32.f32 %v2256_v21  ;;  %v403_v38 = vcvt.s32.f32 %v2259_v22  ;;  %436 = vst [vmem:[%s2414_s10] sm:$0x3f] %v1980_v3 }
  0x83   : > { %vm2279_vm2 = vcmp.eq.f32.partialorder %v2721_v23, 127.0  ;;  %vm2285_vm3 = vcmp.eq.f32.partialorder %v2722_v24, 127.0  ;;  %vm2291_vm4 = vcmp.eq.f32.partialorder %v2723_v25, 127.0  ;;  %vm2297_vm5 = vcmp.eq.f32.partialorder %v2724_v26, 127.0 }
  0x84   : > { %vm2303_vm6 = vcmp.eq.f32.partialorder %v2725_v27, 127.0  ;;  %vm2309_vm7 = vcmp.eq.f32.partialorder %v2726_v28, 127.0  ;;  %vm2315_vm8 = vcmp.eq.f32.partialorder %v2727_v29, 127.0  ;;  %vm2321_vm9 = vcmp.eq.f32.partialorder %v2728_v30, 127.0 }
  0x85   : > { %vm2327_vm10 = vcmp.eq.f32.partialorder %v2729_v31, 127.0  ;;  %vm2333_vm11 = vcmp.eq.f32.partialorder %v2730_v32, 127.0  ;;  %vm2339_vm12 = vcmp.eq.f32.partialorder %v2731_v33, 127.0  ;;  %vm2345_vm13 = vcmp.eq.f32.partialorder %v2732_v34, 127.0 }
  0x86   : > { %v2777_v48 = vsel %vm2333_vm11, 4294967295, %v2776_v48  ;;  %v2779_v49 = vsel %vm2339_vm12, 4294967295, %v2778_v49  ;;  %v2781_v50 = vsel %vm2345_vm13, 4294967295, %v2780_v50  ;;  %vm2351_vm14 = vcmp.eq.f32.partialorder %v2733_v35, 127.0 }
  0x87   : > { %v2783_v51 = vsel %vm2351_vm14, 4294967295, %v2782_v51  ;;  %vm2357_vm15 = vcmp.eq.f32.partialorder %v401_v36, 127.0  ;;  %vm2363_vm0 = vcmp.eq.f32.partialorder %v402_v37, 127.0  ;;  %vm2369_vm1 = vcmp.eq.f32.partialorder %v403_v38, 127.0 }
  0x88   : > { %v2785_v52 = vsel %vm2357_vm15, 4294967295, %v2784_v52  ;;  %v2787_v53 = vsel %vm2363_vm0, 4294967295, %v2786_v53  ;;  %v2789_v54 = vsel %vm2369_vm1, 4294967295, %v2788_v54  ;;  %v514_v55 = vstv %s513_s17  ;;  %s2428_s17 = scalar_lea.vmem [#allocation13], %s1437_s29 }
  0x89   : > { %v520_v56 = vstv %s519_s0  ;;  %v529_v57 = vstv %s528_s16  ;;  %v538_v58 = vstv %s537_s21  ;;  %vm2734_vm13 = vcmask 1040384  }
  0x8a   : > { %vm2736_vm14 = vcmask 57344  }
 0x13a   : > { %v508_v59 = vpop.f32.mrf.mxu0 }
 0x13b   : > { %v515_v60 = vsub.f32 %v508_v59, %v514_v55  ;;  %v521_v61 = vsub.f32 %v508_v59, %v520_v56  ;;  %v530_v62 = vsub.f32 %v508_v59, %v529_v57  ;;  %v539_v63 = vsub.f32 %v508_v59, %v538_v58 }
 0x13c   : > { %v1531_v1 = vpop.f32.mrf.mxu0 }
 0x13d   : > { %v522_v23 = vmul.f32 %v521_v61, %v521_v61  ;;  %v531_v24 = vmul.f32 %v530_v62, %v530_v62  ;;  %v516_v25 = vmul.f32 %v515_v60, %v515_v60  ;;  %v540_v27 = vmul.f32 %v539_v63, %v539_v63 }
 0x13f   : > { %v524_v26 = vrot.slane %v522_v23, 1  ;;  %v533_v29 = vrot.slane %v531_v24, 2  ;;  %v542_v30 = vrot.slane %v540_v27, 3 }
 0x141   : > { %v526_v28 = vadd.f32 %v524_v26, %v516_v25 }
 0x143   : > { %v535_v31 = vadd.f32 %v533_v29, %v526_v28 }
 0x145   : > { %v544_v32 = vadd.f32 %v542_v30, %v535_v31 }
 0x147   : > { %v545_v33 = vmul.f32 -2.0, %v544_v32 }
 0x149   : > { %v547_v34 = vadd.f32 -0.9031654, %v545_v33 }
 0x14b   : > { %v549_v35 = vsel %vm2734_vm13, %v547_v34, -inf }
 0x14c   : > { %550 = vmax.xlane.f32.xlu0 %v549_v35 }
 0x1d5   : > { %v551_v55 = vpop.xlane.xlu0 %550 }
 0x1d6   : > { %v552_v56 = vsub.f32 %v547_v34, %v551_v55 }
 0x1d8   : > { %v553_v57 = vmul.f32 1.442695, %v552_v56 }
 0x1da   : > { %1713 = vpow2.f32 %v553_v57 }
 0x1e7   : > { %v1714_v58 = vpop.eup %1713 }
 0x1e8   : > { %v555_v23 = vsel %vm2734_vm13, %v1714_v58, 0.0 }
 0x1e9   : > { %556 = vadd.xlane.f32.xlu0 %v555_v23 }
 0x272   : > { %v557_v24 = vpop.xlane.xlu0 %556 }
 0x273   : > { %1715 = vlog2.f32 %v557_v24 }
 0x280   : > { %v1716_v25 = vpop.eup %1715 }
 0x281   : > { %v559_v26 = vmul.f32 0.6931472, %v1716_v25 }
 0x283   : > { %v560_v27 = vadd.f32 %v559_v26, %v551_v55 }
 0x285   : > { %v561_v28 = vsub.f32 %v547_v34, %v560_v27  }
 0x287   : > { %v562_v29 = vmul.f32 1.442695, %v561_v28 }
 0x289   : > { %1717 = vpow2.f32 %v562_v29 }
 0x296   : > { %v1718_v30 = vpop.eup %1717 }
 0x297   : > { %1535 = vmatmul.mubr.f32.vlgmr.msra.gmra.mxu1 %v1718_v30  ;;  %v634_v31 = vmul.f32 %v1718_v30, %v1718_v30 }
 0x299   : > { %v635_v32 = vsel %vm2734_vm13, %v634_v31, 0.0  ;;  %vm2735_vm13 = vcmask 65600  }
 0x29a   : > { %636 = vadd.xlane.f32.xlu1 %v635_v32 }
 0x323   : > { %v637_v33 = vpop.xlane.xlu1 %636 }
 0x324   : > { %1719 = vrcp.f32 %v637_v33 }
 0x331   : > { %v1720_v35 = vpop.eup %1719 }
 0x357   : > { %v630_v34 = vpop.f32.mrf.mxu1 }
 0x358   : > { %641 = vst.msk [vmem:[%s2414_s10] sm:$0x1] %vm2736_vm14, %v630_v34 }
 0x359   : > { %643 = vst.msk [vmem:[%s2414_s10] sm:$0x1] %vm2735_vm13, %v1720_v35  ;;  %v1536_v59 = vpop.f32.mrf.mxu1 }
 0x35a LB: >> { %v1982_v3 = vmov 0.0   ;;  %v653_v60 = vmul.f32 1.442695, %v1963_v28  ;;  %v657_v61 = vsub.s32 0, %v2207_v6  ;;  %vm2790_vm13 = vcmp.le.s32.totalorder %v2205_v5, %v2207_v6  ;;  %s723_s23 = smul.u32 6, %s2048_s28  ;;  %s1489_s16 = sshll.u32 %s1971_s12, 3  ;;  %s1971_s12 = sphi %s2435_s12, %s649_s12   ;;  %v1967_v2 = vphi %v2199_v2, %v2835_v2   ;;  %v1963_v28 = vphi %v561_v28, %v2834_v28  }
 0x35b   : >> { %1537 = vmatprep.subr.mxu0 %v1982_v3  ;;  %1572 = vmatprep.subr.mxu1 %v1982_v3  ;;  %vm2791_vm14 = vcmp.le.s32.totalorder %v2205_v5, %v2219_v9  ;;  %vm2792_vm1 = vcmp.le.s32.totalorder %v2205_v5, %v2216_v8  ;;  %vm2793_vm11 = vcmp.le.s32.totalorder %v2205_v5, %v2222_v10  ;;  %s917_s21 = scalar_lea.vmem %s2188_s15, %s1489_s16 [#allocation11]  ;;  %s1492_s9 = sshll.u32 %s1971_s12, 1 }
 0x35c   : >> { %1721 = vpow2.f32 %v653_v60  ;;  %vm2794_vm0 = vcmp.le.s32.totalorder %v2205_v5, %v2226_v11  ;;  %vm2799_vm15 = vcmp.le.s32.totalorder %v2205_v5, %v2241_v16  ;;  %vm2800_vm12 = vcmp.le.s32.totalorder %v2205_v5, %v2244_v17  ;;  %s724_s29 = sadd.s32 %s1971_s12, %s723_s23  ;;  %s1064_s11 = sadd.s32 %s1492_s9, %s2048_s28 }
 0x35d   : >> { %s725_s0 = sld [smem:[#allocation2 + %s724_s29]]  ;;  %s1493_s13 = sshll.u32 %s1064_s11, 2 }
 0x35e   : >> { %s1071_s30 = sadd.s32 1, %s1493_s13  ;;  %s1080_s23 = sadd.s32 2, %s1493_s13 }
 0x35f   : >> { %s1066_s29 = sld [smem:[#allocation7 + %s1493_s13]] }
 0x360   : >> { %s1072_s16 = sld [smem:[#allocation7 + %s1071_s30]] }
 0x363   : >> { %v726_v34 = vstv %s725_s0  ;;  %s1089_s0 = sadd.s32 3, %s1493_s13 }
 0x364   : >> { %v727_v35 = vadd.f32 %v726_v34, %v370_v7  ;;  %s1090_s1 = sld [smem:[#allocation7 + %s1089_s0]] }
 0x366   : >> { %v2503_v59 = vmul.f32 0.0078125, %v727_v35 }
 0x369   : >> { %v1722_v62 = vpop.eup %1721 }
 0x36a   : >> { %v658_v63 = vrot.slane %v1722_v62, %v657_v61 }
 0x36c   : >> { %v659_v1 = vsel %vm2790_vm13, %v658_v63, 0.0  ;;  %v661_v55 = vsel %vm2791_vm14, %v658_v63, 0.0  ;;  %v660_v56 = vsel %vm2792_vm1, %v658_v63, 0.0  ;;  %v662_v57 = vsel %vm2793_vm11, %v658_v63, 0.0 }
 0x36d   : >> { %675 = vadd.xlane.f32.xlu0 %v659_v1  ;;  %679 = vadd.xlane.f32.xlu1 %v661_v55  ;;  %v663_v58 = vsel %vm2794_vm0, %v658_v63, 0.0  ;;  %vm2795_vm13 = vcmp.le.s32.totalorder %v2205_v5, %v2229_v12  ;;  %vm2796_vm14 = vcmp.le.s32.totalorder %v2205_v5, %v2232_v13  ;;  %vm2797_vm1 = vcmp.le.s32.totalorder %v2205_v5, %v2235_v14 }
 0x36e   : >> { %v664_v23 = vsel %vm2795_vm13, %v658_v63, 0.0  ;;  %v665_v24 = vsel %vm2796_vm14, %v658_v63, 0.0  ;;  %v666_v25 = vsel %vm2797_vm1, %v658_v63, 0.0  ;;  %vm2798_vm11 = vcmp.le.s32.totalorder %v2205_v5, %v2238_v15 }
 0x36f   : >> { %v667_v26 = vsel %vm2798_vm11, %v658_v63, 0.0  ;;  %v668_v27 = vsel %vm2799_vm15, %v658_v63, 0.0  ;;  %v669_v28 = vsel %vm2800_vm12, %v658_v63, 0.0  ;;  %vm2801_vm0 = vcmp.le.s32.totalorder %v2205_v5, %v2247_v18 }
 0x370   : >> { %v670_v29 = vsel %vm2801_vm0, %v658_v63, 0.0  ;;  %vm2802_vm13 = vcmp.le.s32.totalorder %v2205_v5, %v2250_v19  ;;  %vm2803_vm14 = vcmp.le.s32.totalorder %v2205_v5, %v2253_v20  ;;  %vm2804_vm1 = vcmp.le.s32.totalorder %v2205_v5, %v2256_v21 }
 0x371   : >> { %677 = vadd.xlane.f32.xlu0 %v660_v56  ;;  %681 = vadd.xlane.f32.xlu1 %v662_v57  ;;  %v671_v30 = vsel %vm2802_vm13, %v658_v63, 0.0  ;;  %v672_v31 = vsel %vm2803_vm14, %v658_v63, 0.0  ;;  %v673_v32 = vsel %vm2804_vm1, %v658_v63, 0.0  ;;  %vm2805_vm11 = vcmp.le.s32.totalorder %v2205_v5, %v2259_v22 }
 0x372   : >> { %v674_v33 = vsel %vm2805_vm11, %v658_v63, 0.0  ;;  %vm1983_vm0 = vmmov 0  }
 0x373   : >> { %1569 = vmatprep.mubr.msk.f32.mxu0 %vm1983_vm0, %v1982_v3  ;;  %1574 = vmatprep.mubr.msk.f32.mxu1 %vm1983_vm0, %v1982_v3 }
 0x375   : >> { %683 = vadd.xlane.f32.xlu0 %v663_v58  ;;  %685 = vadd.xlane.f32.xlu1 %v664_v23 }
 0x379   : >> { %687 = vadd.xlane.f32.xlu0 %v665_v24  ;;  %689 = vadd.xlane.f32.xlu1 %v666_v25 }
 0x37d   : >> { %691 = vadd.xlane.f32.xlu0 %v667_v26  ;;  %693 = vadd.xlane.f32.xlu1 %v668_v27 }
 0x381   : >> { %695 = vadd.xlane.f32.xlu0 %v669_v28  ;;  %697 = vadd.xlane.f32.xlu1 %v670_v29 }
 0x385   : >> { %699 = vadd.xlane.f32.xlu0 %v671_v30  ;;  %701 = vadd.xlane.f32.xlu1 %v672_v31 }
 0x389   : >> { %703 = vadd.xlane.f32.xlu0 %v673_v32  ;;  %705 = vadd.xlane.f32.xlu1 %v674_v33 }
 0x3f6   : >> { %v676_v60 = vpop.xlane.xlu0 %675  ;;  %v680_v61 = vpop.xlane.xlu1 %679 }
 0x3f7   : >> { %v707_v62 = vsel %vm2279_vm2, 2.0, %v676_v60  ;;  %v709_v63 = vsel %vm2291_vm4, 2.0, %v680_v61 }
 0x3f8   : >> { %vm729_vm13 = vcmp.lt.f32.partialorder %v707_v62, %v2503_v59  ;;  %vm731_vm14 = vcmp.lt.f32.partialorder %v709_v63, %v2503_v59 }
 0x3f9   : >> { %v1441_v58 = vsel %vm729_vm13, 1.0, %v1982_v3  ;;  %v1443_v27 = vsel %vm731_vm14, 1.0, %v1982_v3 }
 0x3fa   : >> { %v678_v1 = vpop.xlane.xlu0 %677  ;;  %v682_v55 = vpop.xlane.xlu1 %681 }
 0x3fb   : >> { %v708_v56 = vsel %vm2285_vm3, 2.0, %v678_v1  ;;  %v710_v57 = vsel %vm2297_vm5, 2.0, %v682_v55 }
 0x3fc   : >> { %vm730_vm1 = vcmp.lt.f32.partialorder %v708_v56, %v2503_v59  ;;  %vm732_vm11 = vcmp.lt.f32.partialorder %v710_v57, %v2503_v59 }
 0x3fd   : >> { %v1442_v23 = vsel %vm730_vm1, 1.0, %v1982_v3  ;;  %v1444_v28 = vsel %vm732_vm11, 1.0, %v1982_v3 }
 0x3fe   : >> { %v777_v24 = vadd.f32 %v1442_v23, %v1441_v58  ;;  %v684_v25 = vpop.xlane.xlu0 %683  ;;  %v686_v26 = vpop.xlane.xlu1 %685 }
 0x3ff   : >> { %v711_v29 = vsel %vm2303_vm6, 2.0, %v684_v25  ;;  %v712_v30 = vsel %vm2309_vm7, 2.0, %v686_v26 }
 0x400   : >> { %v778_v31 = vadd.f32 %v1443_v27, %v777_v24  ;;  %vm733_vm12 = vcmp.lt.f32.partialorder %v711_v29, %v2503_v59  ;;  %vm734_vm13 = vcmp.lt.f32.partialorder %v712_v30, %v2503_v59 }
 0x401   : >> { %v1445_v32 = vsel %vm733_vm12, 1.0, %v1982_v3  ;;  %v1446_v60 = vsel %vm734_vm13, 1.0, %v1982_v3  ;;  %vm2806_vm12 = vnez %v2777_v48 }
 0x402   : >> { %v779_v33 = vadd.f32 %v1444_v28, %v778_v31  ;;  %v688_v34 = vpop.xlane.xlu0 %687  ;;  %v690_v35 = vpop.xlane.xlu1 %689 }
 0x403   : >> { %v713_v61 = vsel %vm2315_vm8, 2.0, %v688_v34  ;;  %v714_v62 = vsel %vm2321_vm9, 2.0, %v690_v35 }
 0x404   : >> { %v780_v63 = vadd.f32 %v1445_v32, %v779_v33  ;;  %vm735_vm14 = vcmp.lt.f32.partialorder %v713_v61, %v2503_v59  ;;  %vm736_vm1 = vcmp.lt.f32.partialorder %v714_v62, %v2503_v59 }
 0x405   : >> { %v1447_v1 = vsel %vm735_vm14, 1.0, %v1982_v3  ;;  %v1448_v58 = vsel %vm736_vm1, 1.0, %v1982_v3  ;;  %vm2807_vm14 = vnez %v2779_v49  ;;  %vm2808_vm1 = vnez %v2781_v50 }
 0x406   : >> { %v781_v55 = vadd.f32 %v1446_v60, %v780_v63  ;;  %v692_v56 = vpop.xlane.xlu0 %691  ;;  %v694_v57 = vpop.xlane.xlu1 %693 }
 0x407   : >> { %v715_v23 = vsel %vm2327_vm10, 2.0, %v692_v56  ;;  %v716_v24 = vsel %vm2806_vm12, 2.0, %v694_v57 }
 0x408   : >> { %v782_v25 = vadd.f32 %v1447_v1, %v781_v55  ;;  %vm737_vm11 = vcmp.lt.f32.partialorder %v715_v23, %v2503_v59  ;;  %vm738_vm13 = vcmp.lt.f32.partialorder %v716_v24, %v2503_v59 }
 0x409   : >> { %v1449_v26 = vsel %vm737_vm11, 1.0, %v1982_v3  ;;  %v1450_v30 = vsel %vm738_vm13, 1.0, %v1982_v3  ;;  %vm2809_vm11 = vnez %v2783_v51  ;;  %vm2810_vm13 = vnez %v2785_v52 }
 0x40a   : >> { %v783_v27 = vadd.f32 %v1448_v58, %v782_v25  ;;  %v696_v28 = vpop.xlane.xlu0 %695  ;;  %v698_v29 = vpop.xlane.xlu1 %697 }
 0x40b   : >> { %v717_v31 = vsel %vm2807_vm14, 2.0, %v696_v28  ;;  %v718_v32 = vsel %vm2808_vm1, 2.0, %v698_v29 }
 0x40c   : >> { %v784_v33 = vadd.f32 %v1449_v26, %v783_v27  ;;  %vm739_vm12 = vcmp.lt.f32.partialorder %v717_v31, %v2503_v59  ;;  %vm740_vm15 = vcmp.lt.f32.partialorder %v718_v32, %v2503_v59 }
 0x40d   : >> { %v1451_v34 = vsel %vm739_vm12, 1.0, %v1982_v3  ;;  %v1452_v62 = vsel %vm740_vm15, 1.0, %v1982_v3  ;;  %vm2811_vm15 = vnez %v2787_v53  ;;  %vm2812_vm12 = vnez %v2789_v54 }
 0x40e   : >> { %v785_v35 = vadd.f32 %v1450_v30, %v784_v33  ;;  %v700_v60 = vpop.xlane.xlu0 %699  ;;  %v702_v61 = vpop.xlane.xlu1 %701 }
 0x40f   : >> { %v719_v63 = vsel %vm2809_vm11, 2.0, %v700_v60  ;;  %v720_v1 = vsel %vm2810_vm13, 2.0, %v702_v61 }
 0x410   : >> { %v786_v55 = vadd.f32 %v1451_v34, %v785_v35  ;;  %vm741_vm14 = vcmp.lt.f32.partialorder %v719_v63, %v2503_v59  ;;  %vm742_vm1 = vcmp.lt.f32.partialorder %v720_v1, %v2503_v59  ;;  %v1984_v63 = vmov 1.0  }
 0x411   : >> { %v1453_v56 = vsel %vm741_vm14, 1.0, %v1982_v3  ;;  %v1454_v24 = vsel %vm742_vm1, 1.0, %v1982_v3  ;;  %v2814_v1 = vcvt.s32.f32 %v2247_v18 }
 0x412   : >> { %v787_v57 = vadd.f32 %v1452_v62, %v786_v55  ;;  %v704_v58 = vpop.xlane.xlu0 %703  ;;  %v706_v23 = vpop.xlane.xlu1 %705  ;;  %v2815_v55 = vcvt.s32.f32 %v2244_v17 }
 0x413   : >> { %v721_v25 = vsel %vm2811_vm15, 2.0, %v704_v58  ;;  %v722_v26 = vsel %vm2812_vm12, 2.0, %v706_v23  ;;  %v2818_v58 = vcvt.s32.f32 %v2235_v14  ;;  %v2819_v23 = vcvt.s32.f32 %v2232_v13 }
 0x414   : >> { %v788_v27 = vadd.f32 %v1453_v56, %v787_v57  ;;  %vm743_vm11 = vcmp.lt.f32.partialorder %v721_v25, %v2503_v59  ;;  %vm744_vm13 = vcmp.lt.f32.partialorder %v722_v26, %v2503_v59  ;;  %v2813_v59 = vcvt.s32.f32 %v2250_v19 }
 0x415   : >> { %v1455_v28 = vsel %vm743_vm11, 1.0, %v1982_v3  ;;  %v1456_v30 = vsel %vm744_vm13, 1.0, %v1982_v3  ;;  %v2816_v56 = vcvt.s32.f32 %v2241_v16  ;;  %v2817_v57 = vcvt.s32.f32 %v2238_v15 }
 0x416   : >> { %v789_v29 = vadd.f32 %v1454_v24, %v788_v27  ;;  %v2820_v24 = vcvt.s32.f32 %v2229_v12  ;;  %v2821_v25 = vcvt.s32.f32 %v2226_v11  ;;  %v2822_v26 = vcvt.s32.f32 %v2222_v10 }
 0x417   : >> { %v2823_v27 = vcvt.s32.f32 %v2219_v9 }
 0x418   : >> { %v790_v31 = vadd.f32 %v1455_v28, %v789_v29  ;;  %v2824_v28 = vcvt.s32.f32 %v2216_v8  ;;  %v2825_v29 = vcvt.s32.f32 %v2207_v6 }
 0x41a   : >> { %v791_v32 = vadd.f32 %v1456_v30, %v790_v31 }
 0x41c   : >> { %v792_v33 = vrot.slane %v791_v32, 4 }
 0x41e   : >> { %v793_v34 = vadd.f32 %v792_v33, %v791_v32  ;;  %v918_v32 = vld [vmem:[%s917_s21] sm:$0xff]  ;;  %s1081_s21 = sld [smem:[#allocation7 + %s1080_s23]] }
 0x41f   : >> { %v919_v33 = vmul.f32 0.3, %v918_v32 }
 0x420   : >> { %v794_v35 = vrot.slane %v793_v34, 2 }
 0x422   : >> { %v795_v60 = vadd.f32 %v794_v35, %v793_v34 }
 0x424   : >> { %v796_v61 = vrot.slane %v795_v60, 1 }
 0x426   : >> { %v797_v62 = vadd.f32 %v796_v61, %v795_v60  ;;  %v1073_v61 = vstv %s1072_s16 }
 0x428   : >> { %vm813_vm14 = vcmp.eq.f32.partialorder %v403_v38, %v797_v62  ;;  %vm812_vm1 = vcmp.eq.f32.partialorder %v402_v37, %v797_v62  ;;  %vm811_vm15 = vcmp.eq.f32.partialorder %v401_v36, %v797_v62  ;;  %vm810_vm12 = vcmp.eq.f32.partialorder %v2813_v59, %v797_v62 }
 0x429   : >> { %1538 = vmatpush3.msk.msra.mxu0 %vm813_vm14, %v1984_v63  ;;  %vm809_vm11 = vcmp.eq.f32.partialorder %v2814_v1, %v797_v62  ;;  %vm808_vm13 = vcmp.eq.f32.partialorder %v2815_v55, %v797_v62  ;;  %vm807_vm14 = vcmp.eq.f32.partialorder %v2816_v56, %v797_v62 }
 0x42a   : >> { %1539 = vmatprep.subr.mxu0 %v1982_v3 }
 0x42b   : >> { %1540 = vmatpush3.msk.msra.mxu0 %vm812_vm1, %v1984_v63  ;;  %vm806_vm1 = vcmp.eq.f32.partialorder %v2817_v57, %v797_v62 }
 0x42c   : >> { %1541 = vmatprep.subr.mxu0 %v1982_v3 }
 0x42d   : >> { %1542 = vmatpush3.msk.msra.mxu0 %vm811_vm15, %v1984_v63  ;;  %vm805_vm15 = vcmp.eq.f32.partialorder %v2818_v58, %v797_v62 }
 0x42e   : >> { %1543 = vmatprep.subr.mxu0 %v1982_v3 }
 0x42f   : >> { %1544 = vmatpush3.msk.msra.mxu0 %vm810_vm12, %v1984_v63  ;;  %vm804_vm12 = vcmp.eq.f32.partialorder %v2819_v23, %v797_v62 }
 0x430   : >> { %1545 = vmatprep.subr.mxu0 %v1982_v3 }
 0x431   : >> { %1546 = vmatpush3.msk.msra.mxu0 %vm809_vm11, %v1984_v63  ;;  %vm803_vm11 = vcmp.eq.f32.partialorder %v2820_v24, %v797_v62 }
 0x432   : >> { %1547 = vmatprep.subr.mxu0 %v1982_v3 }
 0x433   : >> { %1548 = vmatpush3.msk.msra.mxu0 %vm808_vm13, %v1984_v63  ;;  %vm802_vm13 = vcmp.eq.f32.partialorder %v2821_v25, %v797_v62 }
 0x434   : >> { %1549 = vmatprep.subr.mxu0 %v1982_v3 }
 0x435   : >> { %1550 = vmatpush3.msk.msra.mxu0 %vm807_vm14, %v1984_v63  ;;  %vm801_vm14 = vcmp.eq.f32.partialorder %v2822_v26, %v797_v62 }
 0x436   : >> { %1551 = vmatprep.subr.mxu0 %v1982_v3 }
 0x437   : >> { %1552 = vmatpush3.msk.msra.mxu0 %vm806_vm1, %v1984_v63  ;;  %vm800_vm1 = vcmp.eq.f32.partialorder %v2823_v27, %v797_v62 }
 0x438   : >> { %1553 = vmatprep.subr.mxu0 %v1982_v3 }
 0x439   : >> { %1554 = vmatpush3.msk.msra.mxu0 %vm805_vm15, %v1984_v63  ;;  %vm799_vm15 = vcmp.eq.f32.partialorder %v2824_v28, %v797_v62 }
 0x43a   : >> { %1555 = vmatprep.subr.mxu0 %v1982_v3 }
 0x43b   : >> { %1556 = vmatpush3.msk.msra.mxu0 %vm804_vm12, %v1984_v63  ;;  %vm798_vm12 = vcmp.eq.f32.partialorder %v2825_v29, %v797_v62  ;;  %v1082_v62 = vstv %s1081_s21 }
 0x43c   : >> { %1557 = vmatprep.subr.mxu0 %v1982_v3 }
 0x43d   : >> { %1558 = vmatpush3.msk.msra.mxu0 %vm803_vm11, %v1984_v63  ;;  %vm2826_vm11 = vcmask 64512  }
 0x43e   : >> { %1559 = vmatprep.subr.mxu0 %v1982_v3 }
 0x43f   : >> { %1560 = vmatpush3.msk.msra.mxu0 %vm802_vm13, %v1984_v63  ;;  %vm2828_vm13 = vmmov %vm2826_vm11 }
 0x440   : >> { %1561 = vmatprep.subr.mxu0 %v1982_v3 }
 0x441   : >> { %1562 = vmatpush3.msk.msra.mxu0 %vm801_vm14, %v1984_v63 }
 0x442   : >> { %1563 = vmatprep.subr.mxu0 %v1982_v3 }
 0x443   : >> { %1564 = vmatpush3.msk.msra.mxu0 %vm800_vm1, %v1984_v63 }
 0x444   : >> { %1565 = vmatprep.subr.mxu0 %v1982_v3 }
 0x445   : >> { %1566 = vmatpush3.msk.msra.mxu0 %vm799_vm15, %v1984_v63  ;;  %vm2832_vm15 = vcmask 57344  }
 0x446   : >> { %1567 = vmatprep.subr.mxu0 %v1982_v3 }
 0x447   : >> { %1568 = vmatpush3.msk.msra.mxu0 %vm798_vm12, %v1984_v63  ;;  %v1091_v63 = vstv %s1090_s1  ;;  %s1192_s1 = scalar_lea.vmem %s2414_s10, %s1971_s12  ;;  %vm2833_vm12 = vcmask 65600   ;;  %s649_s12 = sadd.s32 1, %s1971_s12  }
 0x448   : >> { %1570 = vmatmul.mubr.f32.vlgmr.msra.gmra.mxu0 %v1967_v2  ;;  %p646_p0 = scmp.ge.s32.totalorder %s649_s12, 6  }
 0x449   : > { %s1496_s9 = sshll.u32 (%p646_p0), %s2048_s28, 7  ;;  %s1221_s23 = sshll.u32 (%p646_p0), %s2424_s20, 4  ;;  %s1222_s23 = int_to_ptr.vmem [resolvable:$true] %s1221_s23 }
 0x44a   : > { %s1219_s30 = scalar_lea.hbm (%p646_p0), %s2713_s5, %s1496_s9  ;;  %s1199_s12 = scalar_lea.sflag (%p646_p0), [#allocation4], %s2185_s22 }
 0x44b   : > { %p2836_p7 = scmp.ne.s32.totalorder (%p646_p0), %s2746_s18, 0  ;;  %s1985_s15 = smov (%p646_p0), [#allocation12]  }
 0x44c   : > { %s1841_s10 = sshll.u32 (%p646_p0), %s1985_s15, 4  ;;  %s1842_s10 = int_to_ptr.vmem [resolvable:$false] %s1841_s10 }
 0x44d   : > { %s1843_s0 = scalar_lea.vmem (%p646_p0), %s1842_s10, 256  ;;  %p1844_p13 = scmp.lt.s32.totalorder (%p646_p0), %s1222_s23, %s1842_s10 }
 0x508   : >> { %v912_v30 = vpop.f32.mrf.mxu0 }
 0x509   : >> { %1573 = vmatpush3.msra.mxu1 %v912_v30 }
 0x50a   : >> { %v1571_v31 = vpop.f32.mrf.mxu0  ;;  %1575 = vmatmul.mubr.msk.f32.vlgmr.msra.gmra.mxu1 %vm2826_vm11, %v2196_v0  ;;  %1577 = vmatprep.subr.mxu1 %v1982_v3 }
 0x50b   : >> { %1579 = vmatprep.mubr.msk.f32.mxu1 %vm1983_vm0, %v1982_v3 }
 0x5ca   : >> { %v989_v34 = vpop.f32.mrf.mxu1 }
 0x5cb   : >> { %v2624_v2 = vadd.f32 %v989_v34, %v919_v33  }
 0x5cc   : >> { %v1576_v60 = vpop.f32.mrf.mxu1 }
 0x5cd   : >> { %v2827_v35 = vmov %v2624_v2  ;;  %v1067_v2 = vstv %s1066_s29  ;;  %s1837_s29 = scalar_lea.vmem (%p646_p0), %s1222_s23, 128 }
 0x5ce   : >> { %1578 = vmatpush3.msra.mxu1 %v2827_v35  ;;  %1195 = vst [vmem:[%s2424_s20] sm:$0xff] (%p646_p0), %v2827_v35  ;;  %p1838_p3 = scmp.ne.s32.totalorder (%p646_p0), %s1222_s23, %s1837_s29  ;;  %p1845_p9 = scmp.lt.s32.totalorder (%p646_p0), %s1843_s0, %s1837_s29 }
 0x5cf   : >> { %1580 = vmatmul.mubr.msk.f32.vlgmr.msra.gmra.mxu1 %vm2828_vm13, %v2203_v4  ;;  %1582 = vmatprep.subr.mxu1 %v1982_v3 }
 0x5d0   : >> { %1583 = vmatpush3.xpose.msra.mxu1 %v2827_v35  ;;  %1584 = vmatprep.mubr.msk.f32.mxu1 %vm1983_vm0, %v1982_v3  ;;  %vm2829_vm0 = vcmask 1040384   ;;  %p1839_p5 = pnand (%p646_p0), %p1838_p3, %p2836_p7  ;;  %p1846_p8 = por (%p646_p0), %p1845_p9, %p1844_p13 }
 0x5d1   : >> { %vm2830_vm14 = vmmov %vm2829_vm0 }
 0x5d2   : >> { %vm2831_vm1 = vmmov %vm2829_vm0  ;;  %p1840_p10 = pneg (%p646_p0), %p1839_p5 }
 0x5d4   : > { %p1847_p1 = pnand (%p646_p0), %p1846_p8, %p1840_p10 }
 0x68f   : >> { %v1059_v59 = vpop.f32.mrf.mxu1 }
 0x690   : >> { %v1068_v1 = vsub.f32 %v1059_v59, %v1067_v2  ;;  %v1074_v55 = vsub.f32 %v1059_v59, %v1073_v61  ;;  %v1083_v56 = vsub.f32 %v1059_v59, %v1082_v62  ;;  %v1092_v57 = vsub.f32 %v1059_v59, %v1091_v63 }
 0x691   : >> { %v1581_v3 = vpop.f32.mrf.mxu1 }
 0x692   : >> { %v1075_v58 = vmul.f32 %v1074_v55, %v1074_v55  ;;  %v1084_v23 = vmul.f32 %v1083_v56, %v1083_v56  ;;  %v1069_v24 = vmul.f32 %v1068_v1, %v1068_v1  ;;  %v1093_v26 = vmul.f32 %v1092_v57, %v1092_v57 }
 0x694   : >> { %v1077_v25 = vrot.slane %v1075_v58, 1  ;;  %v1086_v28 = vrot.slane %v1084_v23, 2  ;;  %v1095_v29 = vrot.slane %v1093_v26, 3 }
 0x696   : >> { %v1079_v27 = vadd.f32 %v1077_v25, %v1069_v24 }
 0x698   : >> { %v1088_v30 = vadd.f32 %v1086_v28, %v1079_v27 }
 0x69a   : >> { %v1097_v31 = vadd.f32 %v1095_v29, %v1088_v30 }
 0x69c   : >> { %v1098_v32 = vmul.f32 -2.0, %v1097_v31 }
 0x69e   : >> { %v1099_v33 = vadd.f32 -4.8520303, %v1098_v32 }
 0x6a0   : >> { %v1100_v34 = vadd.f32 -0.9031654, %v1099_v33 }
 0x6a2   : >> { %v1101_v60 = vsel %vm2829_vm0, %v1100_v34, -inf  ;;  %1196 = vst [vmem:[%s2428_s17] sm:$0x1] (%p646_p0), %v1100_v34 }
 0x6a3   : >> { %1102 = vmax.xlane.f32.xlu0 %v1101_v60 }
 0x72c   : >> { %v1103_v2 = vpop.xlane.xlu0 %1102 }
 0x72d   : >> { %v1104_v61 = vsub.f32 %v1100_v34, %v1103_v2 }
 0x72f   : >> { %v1105_v62 = vmul.f32 1.442695, %v1104_v61 }
 0x731   : >> { %1723 = vpow2.f32 %v1105_v62 }
 0x73e   : >> { %v1724_v63 = vpop.eup %1723 }
 0x73f   : >> { %v1107_v59 = vsel %vm2830_vm14, %v1724_v63, 0.0 }
 0x740   : >> { %1108 = vadd.xlane.f32.xlu1 %v1107_v59 }
 0x7c9   : >> { %v1109_v1 = vpop.xlane.xlu1 %1108 }
 0x7ca   : >> { %1725 = vlog2.f32 %v1109_v1 }
 0x7d7   : >> { %v1726_v55 = vpop.eup %1725 }
 0x7d8   : >> { %v1111_v56 = vmul.f32 0.6931472, %v1726_v55 }
 0x7da   : >> { %v1112_v57 = vadd.f32 %v1111_v56, %v1103_v2  ;;  %v2835_v2 = vmov %v2827_v35 }
 0x7dc   : >> { %v1113_v3 = vsub.f32 %v1100_v34, %v1112_v57  }
 0x7de   : >> { %v1114_v58 = vmul.f32 1.442695, %v1113_v3  ;;  %1197 = vst [vmem:[%s2428_s17 + $0x1] sm:$0x1] (%p646_p0), %v1113_v3 }
 0x7e0   : >> { %1727 = vpow2.f32 %v1114_v58 }
 0x7ed   : >> { %v1728_v23 = vpop.eup %1727 }
 0x7ee   : >> { %1585 = vmatmul.mubr.f32.vlgmr.msra.gmra.mxu1 %v1728_v23  ;;  %v1186_v24 = vmul.f32 %v1728_v23, %v1728_v23 }
 0x7f0   : >> { %v1187_v25 = vsel %vm2831_vm1, %v1186_v24, 0.0 }
 0x7f1   : >> { %1188 = vadd.xlane.f32.xlu0 %v1187_v25 }
 0x87a   : >> { %v1189_v26 = vpop.xlane.xlu0 %1188 }
 0x87b   : >> { %1729 = vrcp.f32 %v1189_v26 }
 0x888   : >> { %v1730_v28 = vpop.eup %1729 }
 0x8ac   : > { %648 = sbr.rel (!%p646_p0) target bundleno = 858 (0x35a), region = 140 }
 0x8ae   : >> { %v1182_v27 = vpop.f32.mrf.mxu1 }
 0x8af   : >> { %1193 = vst.msk [vmem:[%s1192_s1] sm:$0x1] %vm2832_vm15, %v1182_v27 }
 0x8b0   : >> { %1194 = vst.msk [vmem:[%s1192_s1] sm:$0x1] %vm2833_vm12, %v1730_v28  ;;  %v1586_v29 = vpop.f32.mrf.mxu1  ;;  %v2834_v28 = vmov %v1113_v3 }
 0x8b1   : > { %1850 = shalt.err (!%p1847_p1)
}
 0x8b2   : > { %s1851_s16 = scalar_lea.hbm %s1219_s30, 128  ;;  %s1855_s1 = scalar_lea.hbm %s2713_s5, 256 }
 0x8b3   : > { %p1852_p11 = scmp.ne.s32.totalorder %s1219_s30, %s1851_s16  ;;  %p1856_p6 = scmp.lt.s32.totalorder %s1219_s30, %s2713_s5 }
 0x8b4   : > { %p1857_p12 = scmp.lt.s32.totalorder %s1855_s1, %s1851_s16 }
 0x8b5   : > { %p1853_p2 = pnand %p1852_p11, %p2836_p7 }
 0x8b6   : > { %p1858_p0 = por %p1857_p12, %p1856_p6 }
 0x8b7   : > { %p1854_p4 = pneg %p1853_p2 }
 0x8b9   : > { %p1859_p3 = pnand %p1858_p0, %p1854_p4 }
 0x8bb   : > { %1862 = shalt.err (!%p1859_p3)
}
 0x8bc   : > { %1608 = dma.vmem_to_hbm [thread:$0]  (%p2836_p7), %s1222_s23, 128, %s1219_s30, %s1199_s12  }
 0x8bd   : > { %s1497_s13 = sshll.u32 %s2048_s28, 5  ;;  %s1234_s29 = sshll.u32 %s2428_s17, 4  ;;  %s1235_s29 = int_to_ptr.vmem [resolvable:$true] %s1234_s29 }
 0x8be   : > { %s1232_s0 = scalar_lea.hbm %s2714_s6, %s1497_s13  ;;  %s1204_s20 = scalar_lea.sflag [#allocation14], %s2185_s22 }
 0x8bf   : > { %s1863_s21 = scalar_lea.vmem %s1235_s29, 32  ;;  %s1986_s16 = smov [#allocation13]  }
 0x8c0   : > { %p1864_p5 = scmp.ne.s32.totalorder %s1235_s29, %s1863_s21  ;;  %s1867_s1 = sshll.u32 %s1986_s16, 4  ;;  %s1868_s1 = int_to_ptr.vmem [resolvable:$false] %s1867_s1 }
 0x8c1   : > { %s1869_s9 = scalar_lea.vmem %s1868_s1, 64  ;;  %p1870_p9 = scmp.lt.s32.totalorder %s1235_s29, %s1868_s1 }
 0x8c2   : > { %p1865_p10 = pnand %p1864_p5, %p2836_p7  ;;  %p1871_p8 = scmp.lt.s32.totalorder %s1869_s9, %s1863_s21 }
 0x8c4   : > { %p1866_p13 = pneg %p1865_p10  ;;  %p1872_p1 = por %p1871_p8, %p1870_p9 }
 0x8c6   : > { %p1873_p11 = pnand %p1872_p1, %p1866_p13 }
 0x8c8   : > { %1876 = shalt.err (!%p1873_p11)
}
 0x8c9   : > { %s1877_s28 = scalar_lea.hbm %s1232_s0, 32  ;;  %s1881_s30 = scalar_lea.hbm %s2714_s6, 64 }
 0x8ca   : > { %p1878_p2 = scmp.ne.s32.totalorder %s1232_s0, %s1877_s28  ;;  %p1882_p12 = scmp.lt.s32.totalorder %s1232_s0, %s2714_s6 }
 0x8cb   : > { %p1883_p0 = scmp.lt.s32.totalorder %s1881_s30, %s1877_s28 }
 0x8cc   : > { %p1879_p4 = pnand %p1878_p2, %p2836_p7 }
 0x8cd   : > { %p1884_p3 = por %p1883_p0, %p1882_p12 }
 0x8ce   : > { %p1880_p6 = pneg %p1879_p4 }
 0x8d0   : > { %p1885_p5 = pnand %p1884_p3, %p1880_p6 }
 0x8d2   : > { %1888 = shalt.err (!%p1885_p5)
}
 0x8d3   : > { %1609 = dma.vmem_to_hbm [thread:$0]  (%p2836_p7), %s1235_s29, 32, %s1232_s0, %s1204_s20  }
 0x8d4 PF: > { %s1249_s11 = sand.u32 1, %s1947_s24   ;;  %p2837_p10 = scmp.ne.s32.totalorder %s2740_s8, 0 }
 0x8d5   : > { %p2838_p13 = scmp.ge.s32.totalorder %s1959_s27, 2  ;;  %s1250_s13 = scalar_lea.sflag [#allocation4], %s1249_s11 }
 0x8d7   : > { %p1630_p9 = pnand %p2838_p13, %p2837_p10 }
 0x8d9   : > { %p1631_p8 = pneg %p1630_p9 }
 0x8db   : > { %1938 = dma.done.wait (%p1631_p8), %s1250_s13, 128  }
 0x8dc   : > { %1940 = vsyncadd (%p1631_p8), %s1250_s13, 4294967168  ;;  %s1259_s15 = scalar_lea.sflag [#allocation14], %s1249_s11 }
 0x8dd   : > { %1942 = dma.done.wait (%p1631_p8), %s1259_s15, 32  }
 0x8de   : > { %1944 = vsyncadd (%p1631_p8), %s1259_s15, 4294967264  ;;  %p25_p7 = scmp.ge.s32.totalorder %s2112_s14, 4   ;;  %s2839_s24 = smov %s1951_s25 }
 0x8df   : > { %s2840_s25 = smov %s1955_s26  ;;  %s2841_s26 = smov %s2128_s19 }
 0x8e0   : > { %s2842_s27 = smov %s2112_s14  ;;  %27 = sbr.rel (!%p25_p7) target bundleno = 12 (0xc), region = 151 }
 0x8e5   :  { %1271 = vsyncpa [#allocation3], 1 }
 0x8e6   :  { %1273 = vsyncpa [#allocation3 + $0x1], 1 }
 0x8e7   :  { %1274 = vsyncpa [#allocation10], 1 }
 0x8e8   :  { %1275 = vsyncpa [#allocation4], 1 }
 0x8e9   :  { %1277 = vsyncpa [#allocation4 + $0x1], 1 }
 0x8ea   :  { %1278 = vsyncpa [#allocation14], 1 }
 0x8eb   :  { %1280 = vsyncpa [#allocation14 + $0x1], 1 }
 0x8ec   :  { %1281 = vsyncpa [#allocation5], 1 }
 0x8ed   :  { %1283 = vsyncpa [#allocation5 + $0x1], 1 }
 0x8ee   :  { %1284 = vsyncpa [#allocation6], 1 }
 0x8ef   :  { %1286 = vsyncpa [#allocation6 + $0x1], 1 }

</bundles_post_ra>
